<compile_context>
chip_gen: v7x
topology: tpu7x:2x2x1
jax: 0.10.0
libtpu: 0.0.40
codegen_flags: <defaults>
</compile_context>

<pallas_src>
import math

import numpy as np
import jax
import jax.numpy as jnp
from jax.experimental import pallas as pl
from jax.experimental.pallas import tpu as pltpu  # noqa: F401  (see production TODOs)

# ----------------------------- small config ---------------------------------
D_MODEL = 32
EXPAND = 2
D_INNER = EXPAND * D_MODEL            # 64
D_STATE = 16
D_CONV = 4
DT_RANK = math.ceil(D_MODEL / 16)     # 2
BATCH = 2
SEQLEN = 8
DT_MIN, DT_MAX, DT_INIT_FLOOR = 0.001, 0.1, 1e-4


def _softplus(x):
    # matches torch.nn.functional.softplus (threshold=20)
    return jnp.where(x > 20.0, x, jnp.log(1.0 + jnp.exp(x)))


def _silu(x):
    return x * jax.nn.sigmoid(x)


# ------------------------------- kernel -------------------------------------
def mamba_kernel(x_ref, w_in_ref, w_conv_ref, b_conv_ref, w_dbc_ref, b_dt_ref,
                 a_t_ref, d_ref, w_out_ref, out_ref, hs_ref, xtail_ref):
    B, L, N, ED = hs_ref.shape
    BL = B * L
    dconv = w_conv_ref.shape[0]

    # ---- fused in_proj: one lane-dense (BL, 2*ED) bf16 matmul, two static lane slices ----
    xz = jnp.dot(x_ref[...], w_in_ref[...], preferred_element_type=jnp.float32)
    x_in = xz[:, :ED]                                                 # (BL, ED) f32, pre-conv
    z = xz[:, ED:]                                                    # (BL, ED) f32

    # ---- conv-cache tail: only the last (dconv-1) pre-conv rows per batch ----
    mts = min(L, dconv - 1)
    for b in range(B):
        tail = x_in[b * L + L - mts:b * L + L, :]
        if mts < dconv - 1:
            tail = jnp.concatenate(
                [jnp.zeros((dconv - 1 - mts, ED), jnp.float32), tail], axis=0)
        xtail_ref[b] = tail                                           # (dconv-1, ED)

    # ---- depthwise causal conv1d, vectorized over the folded (BL, ED) slab ----
    # out[r, c] = b[c] + sum_k w[k, c] * x_in[r + k - (dconv-1), c]   (within each batch)
    w_conv = w_conv_ref[...]                                          # (dconv, ED)
    x_pad = jnp.concatenate(
        [jnp.zeros((dconv - 1, ED), jnp.float32), x_in], axis=0)      # pad once
    t_in_seq = jax.lax.broadcasted_iota(jnp.int32, (BL, ED), 0) % L   # time index inside batch
    conv = b_conv_ref[...] + w_conv[dconv - 1:dconv, :] * x_in        # tap k = dconv-1 (shift 0)
    for k in range(dconv - 1):
        s = dconv - 1 - k                                             # causal shift of tap k
        tap = x_pad[k:k + BL, :]                                      # == x_in shifted down by s
        # mask keeps taps from leaking across the folded batch boundary
        conv = conv + jnp.where(t_in_seq >= s, w_conv[k:k + 1, :] * tap, 0.0)
    xc = _silu(conv)                                                  # (BL, ED) f32

    # ---- fused x_proj + dt_proj + B/C projection: ONE (BL, ED+2N) matmul ----
    dbc = jnp.dot(xc.astype(jnp.bfloat16), w_dbc_ref[...],
                  preferred_element_type=jnp.float32)                 # (BL, ED+2N) f32
    delta = _softplus(dbc[:, :ED] + b_dt_ref[...])                    # (BL, ED)
    Bcol = dbc[:, ED:ED + N][:, :, None]                              # (BL, N, 1)
    Ccol = dbc[:, ED + N:][:, :, None]                                # (BL, N, 1)
    dxc = delta * xc                                                  # (BL, ED)

    # ---- streamed selective scan, state in (N, ED) layout (ED on lanes) ----
    # Only h (2 vregs) + one y row are live across steps; hs is stored per step,
    # the C-readout is accumulated in-loop (no stacked dA/bx/hs slabs -> no spills).
    a_t = a_t_ref[...]                                                # (N, ED) = -exp(A_log)^T
    y_rows = []
    for b in range(B):
        h = jnp.zeros((N, ED), jnp.float32)
        for t in range(L):
            r = b * L + t
            dA_t = jnp.exp(delta[r:r + 1, :] * a_t)                   # (N, ED)
            bx_t = Bcol[r] * dxc[r:r + 1, :]                          # (N, ED)
            h = dA_t * h + bx_t
            hs_ref[b, t] = h.astype(jnp.bfloat16)                     # streaming bf16 store
            y_rows.append(jnp.sum(h * Ccol[r], axis=0, keepdims=True))  # C-readout, (1, ED)
    y = jnp.concatenate(y_rows, axis=0) + d_ref[...] * xc             # (BL, ED)

    # ---- gate + out_proj ----
    gated = (y * _silu(z)).astype(jnp.bfloat16)
    out_ref[...] = jnp.dot(gated, w_out_ref[...],
                           preferred_element_type=jnp.float32)        # (BL, Dm) f32


# ------------------------------- wrapper -------------------------------------
@jax.jit
def mamba_block_forward(x, w_in, w_conv, b_conv, w_xproj, w_dt, b_dt,
                        A_log, D_param, w_out):
    B, L, Dm = x.shape
    ED, N = A_log.shape
    dconv = w_conv.shape[-1]
    dt_rank = w_dt.shape[-1]

    # ---- weight prep: pre-transposed to (in, out); MXU operands in bf16 ----
    w_in_f = w_in.T.astype(jnp.bfloat16)                         # (Dm, 2*ED): [x-half | z-half]
    w_conv_k = w_conv[:, 0, :].T                                 # (dconv, ED) f32
    b_conv2 = b_conv[None, :]                                    # (1, ED) f32
    # delta = softplus(xc @ xproj_delta.T @ dt_proj.T + b_dt): fold the two matmuls (f32),
    # then fuse with the B/C projection into one (ED, ED+2N) weight.
    w_delta = w_xproj[:dt_rank, :].T @ w_dt.T                    # (ED, ED) f32 fold
    w_bc = w_xproj[dt_rank:, :].T                                # (ED, 2N)
    w_dbc = jnp.concatenate([w_delta, w_bc], axis=1).astype(jnp.bfloat16)  # (ED, ED+2N)
    b_dt2 = b_dt[None, :]                                        # (1, ED) f32
    a_t = (-jnp.exp(A_log)).T                                    # (N, ED) f32, hoisted exp
    d2 = D_param[None, :]                                        # (1, ED) f32
    w_out_t = w_out.T.astype(jnp.bfloat16)                       # (ED, Dm)
    x2d = x.reshape(B * L, Dm).astype(jnp.bfloat16)              # batch folded into rows

    out_shapes = (
        jax.ShapeDtypeStruct((B * L, Dm), jnp.float32),          # output (folded rows)
        jax.ShapeDtypeStruct((B, L, N, ED), jnp.bfloat16),       # hs, kernel-native layout
        jax.ShapeDtypeStruct((B, dconv - 1, ED), jnp.float32),   # conv-cache tail
    )

    # Single invocation (no grid): every operand fits VMEM whole at these shapes, so no
    # BlockSpec tiling is needed — all refs are whole-array VMEM blocks.
    out2d, hs_nk, xtail = pl.pallas_call(
        mamba_kernel,
        out_shape=out_shapes,
    )(x2d, w_in_f, w_conv_k, b_conv2, w_dbc, b_dt2, a_t, d2, w_out_t)

    # glue: restore reference layouts / build the cache
    out = out2d.reshape(B, L, Dm)                                # free (leading-dim reshape)
    # bf16 halves this relayout's HBM traffic; production consumers should take hs_nk as-is.
    hs = jnp.transpose(hs_nk, (0, 1, 3, 2)).astype(jnp.float32)  # (B, L, ED, N)
    inputs = jnp.transpose(xtail, (0, 2, 1))                     # (B, ED, dconv-1)
    cache = (hs[:, -1], inputs)
    return out, hs, cache


# -------------------------- pure-JAX reference -------------------------------
def ref_forward(x, w_in, w_conv, b_conv, w_xproj, w_dt, b_dt, A_log, D_param, w_out):
    B, L, Dm = x.shape
    xz = x @ w_in.T
    x_in, z = xz[..., :D_INNER], xz[..., D_INNER:]
    x_t = jnp.transpose(x_in, (0, 2, 1))                         # (B, ED, L)

    # conv-cache "inputs" (cache is None path of the module)
    mts = min(L, D_CONV - 1)
    inputs = jnp.zeros((B, D_INNER, D_CONV - 1), jnp.float32)
    inputs = inputs.at[:, :, -mts:].set(x_t[:, :, L - mts:])

    xpad = jnp.pad(x_t, ((0, 0), (0, 0), (D_CONV - 1, 0)))
    conv = jnp.zeros_like(x_t) + b_conv[None, :, None]
    for k in range(D_CONV):
        conv = conv + xpad[:, :, k:k + L] * w_conv[:, 0, k][None, :, None]
    xc = _silu(jnp.transpose(conv, (0, 2, 1)))                   # (B, L, ED)

    dBC = xc @ w_xproj.T
    delta_r = dBC[..., :DT_RANK]
    Bm = dBC[..., DT_RANK:DT_RANK + D_STATE]
    Cm = dBC[..., DT_RANK + D_STATE:]
    delta = _softplus(delta_r @ w_dt.T + b_dt)

    A = -jnp.exp(A_log)
    deltaA = jnp.exp(delta[..., None] * A)
    BX = (delta[..., None] * Bm[:, :, None, :]) * xc[..., None]
    h = jnp.zeros((B, D_INNER, D_STATE), jnp.float32)
    hs = []
    for t in range(L):
        h = deltaA[:, t] * h + BX[:, t]
        hs.append(h)
    hs = jnp.stack(hs, axis=1)
    y = jnp.sum(hs * Cm[:, :, None, :], axis=-1) + D_param * xc
    out = (y * _silu(z)) @ w_out.T
    return out, hs, inputs


# ------------------------- deterministic params -------------------------------
def init_params(key):
    ks = jax.random.split(key, 8)
    u = lambda k, shape, b: jax.random.uniform(k, shape, jnp.float32, -b, b)

    w_in = u(ks[0], (2 * D_INNER, D_MODEL), 1.0 / math.sqrt(D_MODEL))
    w_conv = u(ks[1], (D_INNER, 1, D_CONV), 1.0 / math.sqrt(D_CONV))
    b_conv = u(ks[2], (D_INNER,), 1.0 / math.sqrt(D_CONV))
    w_xproj = u(ks[3], (DT_RANK + 2 * D_STATE, D_INNER), 1.0 / math.sqrt(D_INNER))

    dt_init_std = DT_RANK ** (-0.5)
    w_dt = u(ks[4], (D_INNER, DT_RANK), dt_init_std)
    dt = jnp.exp(jax.random.uniform(ks[5], (D_INNER,), jnp.float32)
                 * (math.log(DT_MAX) - math.log(DT_MIN)) + math.log(DT_MIN))
    dt = jnp.clip(dt, DT_INIT_FLOOR, None)
    b_dt = dt + jnp.log(-jnp.expm1(-dt))

    A = jnp.tile(jnp.arange(1, D_STATE + 1, dtype=jnp.float32)[None, :], (D_INNER, 1))
    A_log = jnp.log(A)
    D_param = jnp.ones((D_INNER,), jnp.float32)
    w_out = u(ks[6], (D_MODEL, D_INNER), 1.0 / math.sqrt(D_INNER))
    x = jax.random.normal(ks[7], (BATCH, SEQLEN, D_MODEL), jnp.float32)
    return x, (w_in, w_conv, b_conv, w_xproj, w_dt, b_dt, A_log, D_param, w_out)


if __name__ == "__main__":
    x, params = init_params(jax.random.PRNGKey(0))

    out, hs, cache = mamba_block_forward(x, *params)
    jax.block_until_ready((out, hs, cache))

    out_exp, hs_exp, inputs_exp = ref_forward(x, *params)
    # bf16 MXU operands / bf16 hs storage -> 2e-2 tolerances
    np.testing.assert_allclose(np.asarray(out), np.asarray(out_exp), rtol=2e-2, atol=2e-2)
    np.testing.assert_allclose(np.asarray(hs), np.asarray(hs_exp), rtol=2e-2, atol=2e-2)
    # cache sanity: h_last matches last scan state, conv cache matches last d_conv-1 inputs
    np.testing.assert_allclose(np.asarray(cache[0]), np.asarray(hs_exp[:, -1]),
                               rtol=2e-2, atol=2e-2)
    np.testing.assert_allclose(np.asarray(cache[1]), np.asarray(inputs_exp),
                               rtol=2e-2, atol=2e-2)

    print("KERNEL_OK")
</pallas_src>

<mosaic_0001>
module attributes {stable_mosaic.version = 11 : i64} {
  func.func @mamba_kernel(%arg0: memref<16x32xbf16, #tpu.memory_space<vmem>>, %arg1: memref<32x128xbf16, #tpu.memory_space<vmem>>, %arg2: memref<4x64xf32, #tpu.memory_space<vmem>>, %arg3: memref<1x64xf32, #tpu.memory_space<vmem>>, %arg4: memref<64x96xbf16, #tpu.memory_space<vmem>>, %arg5: memref<1x64xf32, #tpu.memory_space<vmem>>, %arg6: memref<16x64xf32, #tpu.memory_space<vmem>>, %arg7: memref<1x64xf32, #tpu.memory_space<vmem>>, %arg8: memref<64x32xbf16, #tpu.memory_space<vmem>>, %arg9: memref<16x32xf32, #tpu.memory_space<vmem>>, %arg10: memref<2x8x16x64xbf16, #tpu.memory_space<vmem>>, %arg11: memref<2x3x64xf32, #tpu.memory_space<vmem>>) attributes {dimension_semantics = [], scalar_prefetch = 0 : i64, scratch_operands = 0 : i64, tpu.core_type = #tpu.core_type<tc>} {
    %c0 = arith.constant 0 : index
    %c0_0 = arith.constant 0 : index
    %0 = vector.load %arg0[%c0, %c0_0] : memref<16x32xbf16, #tpu.memory_space<vmem>>, vector<16x32xbf16>
    %c0_1 = arith.constant 0 : index
    %c0_2 = arith.constant 0 : index
    %1 = vector.load %arg1[%c0_1, %c0_2] : memref<32x128xbf16, #tpu.memory_space<vmem>>, vector<32x128xbf16>
    %cst = arith.constant dense<0.000000e+00> : vector<16x128xf32>
    %2 = tpu.matmul %0, %1, %cst {dimension_numbers = #tpu.dot_dimension_numbers<[1], [0], [0], [1], [0, 0, 1, 1], [], []>} : vector<16x32xbf16>, vector<32x128xbf16>, vector<16x128xf32> -> vector<16x128xf32>
    %3 = vector.extract_strided_slice %2 {offsets = [0, 0], sizes = [16, 64], strides = [1, 1]} : vector<16x128xf32> to vector<16x64xf32>
    %4 = vector.extract_strided_slice %2 {offsets = [0, 64], sizes = [16, 64], strides = [1, 1]} : vector<16x128xf32> to vector<16x64xf32>
    %5 = vector.extract_strided_slice %3 {offsets = [5, 0], sizes = [3, 64], strides = [1, 1]} : vector<16x64xf32> to vector<3x64xf32>
    %c0_3 = arith.constant 0 : index
    %c0_4 = arith.constant 0 : index
    %c0_5 = arith.constant 0 : index
    %6 = vector.load %arg11[%c0_3, %c0_4, %c0_5] : memref<2x3x64xf32, #tpu.memory_space<vmem>>, vector<1x3x64xf32>
    %7 = vector.shape_cast %6 : vector<1x3x64xf32> to vector<3x64xf32>
    %8 = vector.shape_cast %5 : vector<3x64xf32> to vector<1x3x64xf32>
    tpu.vector_store %arg11[%c0_3, %c0_4, %c0_5], %8 {strides = array<i32>} : memref<2x3x64xf32, #tpu.memory_space<vmem>>, vector<1x3x64xf32>,
    %9 = vector.extract_strided_slice %3 {offsets = [13, 0], sizes = [3, 64], strides = [1, 1]} : vector<16x64xf32> to vector<3x64xf32>
    %c1 = arith.constant 1 : index
    %c0_6 = arith.constant 0 : index
    %c0_7 = arith.constant 0 : index
    %10 = vector.load %arg11[%c1, %c0_6, %c0_7] : memref<2x3x64xf32, #tpu.memory_space<vmem>>, vector<1x3x64xf32>
    %11 = vector.shape_cast %10 : vector<1x3x64xf32> to vector<3x64xf32>
    %12 = vector.shape_cast %9 : vector<3x64xf32> to vector<1x3x64xf32>
    tpu.vector_store %arg11[%c1, %c0_6, %c0_7], %12 {strides = array<i32>} : memref<2x3x64xf32, #tpu.memory_space<vmem>>, vector<1x3x64xf32>,
    %c0_8 = arith.constant 0 : index
    %c0_9 = arith.constant 0 : index
    %13 = vector.load %arg2[%c0_8, %c0_9] : memref<4x64xf32, #tpu.memory_space<vmem>>, vector<4x64xf32>
    %cst_10 = arith.constant 0.000000e+00 : f32
    %14 = vector.broadcast %cst_10 : f32 to vector<3x64xf32>
    %15 = tpu.concatenate %14, %3 in 0 : vector<3x64xf32>, vector<16x64xf32> -> vector<19x64xf32>
    %16 = tpu.iota {dimensions = array<i32: 0>} : vector<16x64xi32>
    %c8_i32 = arith.constant 8 : i32
    %c0_i32 = arith.constant 0 : i32
    %17 = arith.cmpi eq, %c8_i32, %c0_i32 : i32
    %c1_i32 = arith.constant 1 : i32
    %18 = arith.select %17, %c1_i32, %c8_i32 : i32
    %19 = vector.broadcast %18 : i32 to vector<16x64xi32>
    %20 = arith.remsi %16, %19 : vector<16x64xi32>
    %c0_i32_11 = arith.constant 0 : i32
    %21 = vector.broadcast %c0_i32_11 : i32 to vector<16x64xi32>
    %22 = arith.cmpi ne, %20, %21 : vector<16x64xi32>
    %c0_i32_12 = arith.constant 0 : i32
    %23 = vector.broadcast %c0_i32_12 : i32 to vector<16x64xi32>
    %24 = arith.cmpi slt, %20, %23 : vector<16x64xi32>
    %c0_i32_13 = arith.constant 0 : i32
    %25 = arith.cmpi slt, %18, %c0_i32_13 : i32
    %26 = vector.broadcast %25 : i1 to vector<16x64xi1>
    %27 = vector.broadcast %26 : vector<16x64xi1> to vector<16x64xi1>
    %28 = arith.xori %24, %27 : vector<16x64xi1>
    %29 = arith.andi %28, %22 : vector<16x64xi1>
    %30 = vector.broadcast %18 : i32 to vector<16x64xi32>
    %31 = arith.addi %20, %30 : vector<16x64xi32>
    %32 = arith.select %29, %31, %20 : vector<16x64xi1>, vector<16x64xi32>
    %c0_14 = arith.constant 0 : index
    %c0_15 = arith.constant 0 : index
    %33 = vector.load %arg3[%c0_14, %c0_15] : memref<1x64xf32, #tpu.memory_space<vmem>>, vector<1x64xf32>
    %34 = vector.extract_strided_slice %13 {offsets = [3, 0], sizes = [1, 64], strides = [1, 1]} : vector<4x64xf32> to vector<1x64xf32>
    %35 = vector.broadcast %34 : vector<1x64xf32> to vector<16x64xf32>
    %36 = arith.mulf %35, %3 : vector<16x64xf32>
    %37 = vector.broadcast %33 : vector<1x64xf32> to vector<16x64xf32>
    %38 = arith.addf %37, %36 : vector<16x64xf32>
    %39 = vector.extract_strided_slice %15 {offsets = [0, 0], sizes = [16, 64], strides = [1, 1]} : vector<19x64xf32> to vector<16x64xf32>
    %c3_i32 = arith.constant 3 : i32
    %40 = vector.broadcast %c3_i32 : i32 to vector<16x64xi32>
    %41 = arith.cmpi sge, %32, %40 : vector<16x64xi32>
    %42 = vector.extract_strided_slice %13 {offsets = [0, 0], sizes = [1, 64], strides = [1, 1]} : vector<4x64xf32> to vector<1x64xf32>
    %43 = vector.broadcast %42 : vector<1x64xf32> to vector<16x64xf32>
    %44 = arith.mulf %43, %39 : vector<16x64xf32>
    %cst_16 = arith.constant 0.000000e+00 : f32
    %45 = vector.broadcast %cst_16 : f32 to vector<16x64xf32>
    %46 = arith.select %41, %44, %45 : vector<16x64xi1>, vector<16x64xf32>
    %47 = arith.addf %38, %46 : vector<16x64xf32>
    %48 = vector.extract_strided_slice %15 {offsets = [1, 0], sizes = [16, 64], strides = [1, 1]} : vector<19x64xf32> to vector<16x64xf32>
    %c2_i32 = arith.constant 2 : i32
    %49 = vector.broadcast %c2_i32 : i32 to vector<16x64xi32>
    %50 = arith.cmpi sge, %32, %49 : vector<16x64xi32>
    %51 = vector.extract_strided_slice %13 {offsets = [1, 0], sizes = [1, 64], strides = [1, 1]} : vector<4x64xf32> to vector<1x64xf32>
    %52 = vector.broadcast %51 : vector<1x64xf32> to vector<16x64xf32>
    %53 = arith.mulf %52, %48 : vector<16x64xf32>
    %cst_17 = arith.constant 0.000000e+00 : f32
    %54 = vector.broadcast %cst_17 : f32 to vector<16x64xf32>
    %55 = arith.select %50, %53, %54 : vector<16x64xi1>, vector<16x64xf32>
    %56 = arith.addf %47, %55 : vector<16x64xf32>
    %57 = vector.extract_strided_slice %15 {offsets = [2, 0], sizes = [16, 64], strides = [1, 1]} : vector<19x64xf32> to vector<16x64xf32>
    %c1_i32_18 = arith.constant 1 : i32
    %58 = vector.broadcast %c1_i32_18 : i32 to vector<16x64xi32>
    %59 = arith.cmpi sge, %32, %58 : vector<16x64xi32>
    %60 = vector.extract_strided_slice %13 {offsets = [2, 0], sizes = [1, 64], strides = [1, 1]} : vector<4x64xf32> to vector<1x64xf32>
    %61 = vector.broadcast %60 : vector<1x64xf32> to vector<16x64xf32>
    %62 = arith.mulf %61, %57 : vector<16x64xf32>
    %cst_19 = arith.constant 0.000000e+00 : f32
    %63 = vector.broadcast %cst_19 : f32 to vector<16x64xf32>
    %64 = arith.select %59, %62, %63 : vector<16x64xi1>, vector<16x64xf32>
    %65 = arith.addf %56, %64 : vector<16x64xf32>
    %66 = arith.negf %65 : vector<16x64xf32>
    %67 = math.exp %66 : vector<16x64xf32>
    %cst_20 = arith.constant 1.000000e+00 : f32
    %68 = vector.broadcast %cst_20 : f32 to vector<16x64xf32>
    %69 = arith.addf %68, %67 : vector<16x64xf32>
    %70 = arith.divf %68, %69 : vector<16x64xf32>
    %71 = arith.mulf %65, %70 : vector<16x64xf32>
    %72 = arith.truncf %71 : vector<16x64xf32> to vector<16x64xbf16>
    %c0_21 = arith.constant 0 : index
    %c0_22 = arith.constant 0 : index
    %73 = vector.load %arg4[%c0_21, %c0_22] : memref<64x96xbf16, #tpu.memory_space<vmem>>, vector<64x96xbf16>
    %cst_23 = arith.constant dense<0.000000e+00> : vector<16x96xf32>
    %74 = tpu.matmul %72, %73, %cst_23 {dimension_numbers = #tpu.dot_dimension_numbers<[1], [0], [0], [1], [0, 0, 1, 1], [], []>} : vector<16x64xbf16>, vector<64x96xbf16>, vector<16x96xf32> -> vector<16x96xf32>
    %75 = vector.extract_strided_slice %74 {offsets = [0, 0], sizes = [16, 64], strides = [1, 1]} : vector<16x96xf32> to vector<16x64xf32>
    %c0_24 = arith.constant 0 : index
    %c0_25 = arith.constant 0 : index
    %76 = vector.load %arg5[%c0_24, %c0_25] : memref<1x64xf32, #tpu.memory_space<vmem>>, vector<1x64xf32>
    %77 = vector.broadcast %76 : vector<1x64xf32> to vector<16x64xf32>
    %78 = arith.addf %75, %77 : vector<16x64xf32>
    %cst_26 = arith.constant 2.000000e+01 : f32
    %79 = vector.broadcast %cst_26 : f32 to vector<16x64xf32>
    %80 = arith.cmpf ogt, %78, %79 : vector<16x64xf32>
    %81 = math.exp %78 : vector<16x64xf32>
    %cst_27 = arith.constant 1.000000e+00 : f32
    %82 = vector.broadcast %cst_27 : f32 to vector<16x64xf32>
    %83 = arith.addf %82, %81 : vector<16x64xf32>
    %84 = math.log %83 : vector<16x64xf32>
    %85 = arith.select %80, %78, %84 : vector<16x64xi1>, vector<16x64xf32>
    %86 = vector.extract_strided_slice %74 {offsets = [0, 64], sizes = [16, 16], strides = [1, 1]} : vector<16x96xf32> to vector<16x16xf32>
    %87 = vector.shape_cast %86 : vector<16x16xf32> to vector<16x16x1xf32>
    %88 = vector.extract_strided_slice %74 {offsets = [0, 80], sizes = [16, 16], strides = [1, 1]} : vector<16x96xf32> to vector<16x16xf32>
    %89 = vector.shape_cast %88 : vector<16x16xf32> to vector<16x16x1xf32>
    %90 = arith.mulf %85, %71 : vector<16x64xf32>
    %c0_28 = arith.constant 0 : index
    %c0_29 = arith.constant 0 : index
    %91 = vector.load %arg6[%c0_28, %c0_29] : memref<16x64xf32, #tpu.memory_space<vmem>>, vector<16x64xf32>
    %cst_30 = arith.constant 0.000000e+00 : f32
    %92 = vector.broadcast %cst_30 : f32 to vector<16x64xf32>
    %93 = vector.extract_strided_slice %85 {offsets = [0, 0], sizes = [1, 64], strides = [1, 1]} : vector<16x64xf32> to vector<1x64xf32>
    %94 = vector.broadcast %93 : vector<1x64xf32> to vector<16x64xf32>
    %95 = arith.mulf %94, %91 : vector<16x64xf32>
    %96 = math.exp %95 : vector<16x64xf32>
    %97 = vector.extract_strided_slice %87 {offsets = [0, 0, 0], sizes = [1, 16, 1], strides = [1, 1, 1]} : vector<16x16x1xf32> to vector<1x16x1xf32>
    %98 = vector.shape_cast %97 : vector<1x16x1xf32> to vector<16x1xf32>
    %99 = vector.extract_strided_slice %90 {offsets = [0, 0], sizes = [1, 64], strides = [1, 1]} : vector<16x64xf32> to vector<1x64xf32>
    %100 = vector.broadcast %98 : vector<16x1xf32> to vector<16x64xf32>
    %101 = vector.broadcast %99 : vector<1x64xf32> to vector<16x64xf32>
    %102 = arith.mulf %100, %101 : vector<16x64xf32>
    %103 = arith.mulf %96, %92 : vector<16x64xf32>
    %104 = arith.addf %103, %102 : vector<16x64xf32>
    %105 = arith.truncf %104 : vector<16x64xf32> to vector<16x64xbf16>
    %c0_31 = arith.constant 0 : index
    %c0_32 = arith.constant 0 : index
    %c0_33 = arith.constant 0 : index
    %c0_34 = arith.constant 0 : index
    %106 = vector.load %arg10[%c0_31, %c0_32, %c0_33, %c0_34] : memref<2x8x16x64xbf16, #tpu.memory_space<vmem>>, vector<1x1x16x64xbf16>
    %107 = vector.shape_cast %106 : vector<1x1x16x64xbf16> to vector<16x64xbf16>
    %108 = vector.shape_cast %105 : vector<16x64xbf16> to vector<1x1x16x64xbf16>
    tpu.vector_store %arg10[%c0_31, %c0_32, %c0_33, %c0_34], %108 {strides = array<i32>} : memref<2x8x16x64xbf16, #tpu.memory_space<vmem>>, vector<1x1x16x64xbf16>,
    %109 = vector.extract_strided_slice %89 {offsets = [0, 0, 0], sizes = [1, 16, 1], strides = [1, 1, 1]} : vector<16x16x1xf32> to vector<1x16x1xf32>
    %110 = vector.shape_cast %109 : vector<1x16x1xf32> to vector<16x1xf32>
    %111 = vector.broadcast %110 : vector<16x1xf32> to vector<16x64xf32>
    %112 = arith.mulf %104, %111 : vector<16x64xf32>
    %cst_35 = arith.constant dense<0.000000e+00> : vector<64xf32>
    %113 = vector.multi_reduction <add>, %112, %cst_35 [0] : vector<16x64xf32> to vector<64xf32>
    %114 = vector.shape_cast %113 : vector<64xf32> to vector<1x64xf32>
    %115 = vector.extract_strided_slice %85 {offsets = [1, 0], sizes = [1, 64], strides = [1, 1]} : vector<16x64xf32> to vector<1x64xf32>
    %116 = vector.broadcast %115 : vector<1x64xf32> to vector<16x64xf32>
    %117 = arith.mulf %116, %91 : vector<16x64xf32>
    %118 = math.exp %117 : vector<16x64xf32>
    %119 = vector.extract_strided_slice %87 {offsets = [1, 0, 0], sizes = [1, 16, 1], strides = [1, 1, 1]} : vector<16x16x1xf32> to vector<1x16x1xf32>
    %120 = vector.shape_cast %119 : vector<1x16x1xf32> to vector<16x1xf32>
    %121 = vector.extract_strided_slice %90 {offsets = [1, 0], sizes = [1, 64], strides = [1, 1]} : vector<16x64xf32> to vector<1x64xf32>
    %122 = vector.broadcast %120 : vector<16x1xf32> to vector<16x64xf32>
    %123 = vector.broadcast %121 : vector<1x64xf32> to vector<16x64xf32>
    %124 = arith.mulf %122, %123 : vector<16x64xf32>
    %125 = arith.mulf %118, %104 : vector<16x64xf32>
    %126 = arith.addf %125, %124 : vector<16x64xf32>
    %127 = arith.truncf %126 : vector<16x64xf32> to vector<16x64xbf16>
    %c0_36 = arith.constant 0 : index
    %c1_37 = arith.constant 1 : index
    %c0_38 = arith.constant 0 : index
    %c0_39 = arith.constant 0 : index
    %128 = vector.load %arg10[%c0_36, %c1_37, %c0_38, %c0_39] : memref<2x8x16x64xbf16, #tpu.memory_space<vmem>>, vector<1x1x16x64xbf16>
    %129 = vector.shape_cast %128 : vector<1x1x16x64xbf16> to vector<16x64xbf16>
    %130 = vector.shape_cast %127 : vector<16x64xbf16> to vector<1x1x16x64xbf16>
    tpu.vector_store %arg10[%c0_36, %c1_37, %c0_38, %c0_39], %130 {strides = array<i32>} : memref<2x8x16x64xbf16, #tpu.memory_space<vmem>>, vector<1x1x16x64xbf16>,
    %131 = vector.extract_strided_slice %89 {offsets = [1, 0, 0], sizes = [1, 16, 1], strides = [1, 1, 1]} : vector<16x16x1xf32> to vector<1x16x1xf32>
    %132 = vector.shape_cast %131 : vector<1x16x1xf32> to vector<16x1xf32>
    %133 = vector.broadcast %132 : vector<16x1xf32> to vector<16x64xf32>
    %134 = arith.mulf %126, %133 : vector<16x64xf32>
    %cst_40 = arith.constant dense<0.000000e+00> : vector<64xf32>
    %135 = vector.multi_reduction <add>, %134, %cst_40 [0] : vector<16x64xf32> to vector<64xf32>
    %136 = vector.shape_cast %135 : vector<64xf32> to vector<1x64xf32>
    %137 = vector.extract_strided_slice %85 {offsets = [2, 0], sizes = [1, 64], strides = [1, 1]} : vector<16x64xf32> to vector<1x64xf32>
    %138 = vector.broadcast %137 : vector<1x64xf32> to vector<16x64xf32>
    %139 = arith.mulf %138, %91 : vector<16x64xf32>
    %140 = math.exp %139 : vector<16x64xf32>
    %141 = vector.extract_strided_slice %87 {offsets = [2, 0, 0], sizes = [1, 16, 1], strides = [1, 1, 1]} : vector<16x16x1xf32> to vector<1x16x1xf32>
    %142 = vector.shape_cast %141 : vector<1x16x1xf32> to vector<16x1xf32>
    %143 = vector.extract_strided_slice %90 {offsets = [2, 0], sizes = [1, 64], strides = [1, 1]} : vector<16x64xf32> to vector<1x64xf32>
    %144 = vector.broadcast %142 : vector<16x1xf32> to vector<16x64xf32>
    %145 = vector.broadcast %143 : vector<1x64xf32> to vector<16x64xf32>
    %146 = arith.mulf %144, %145 : vector<16x64xf32>
    %147 = arith.mulf %140, %126 : vector<16x64xf32>
    %148 = arith.addf %147, %146 : vector<16x64xf32>
    %149 = arith.truncf %148 : vector<16x64xf32> to vector<16x64xbf16>
    %c0_41 = arith.constant 0 : index
    %c2 = arith.constant 2 : index
    %c0_42 = arith.constant 0 : index
    %c0_43 = arith.constant 0 : index
    %150 = vector.load %arg10[%c0_41, %c2, %c0_42, %c0_43] : memref<2x8x16x64xbf16, #tpu.memory_space<vmem>>, vector<1x1x16x64xbf16>
    %151 = vector.shape_cast %150 : vector<1x1x16x64xbf16> to vector<16x64xbf16>
    %152 = vector.shape_cast %149 : vector<16x64xbf16> to vector<1x1x16x64xbf16>
    tpu.vector_store %arg10[%c0_41, %c2, %c0_42, %c0_43], %152 {strides = array<i32>} : memref<2x8x16x64xbf16, #tpu.memory_space<vmem>>, vector<1x1x16x64xbf16>,
    %153 = vector.extract_strided_slice %89 {offsets = [2, 0, 0], sizes = [1, 16, 1], strides = [1, 1, 1]} : vector<16x16x1xf32> to vector<1x16x1xf32>
    %154 = vector.shape_cast %153 : vector<1x16x1xf32> to vector<16x1xf32>
    %155 = vector.broadcast %154 : vector<16x1xf32> to vector<16x64xf32>
    %156 = arith.mulf %148, %155 : vector<16x64xf32>
    %cst_44 = arith.constant dense<0.000000e+00> : vector<64xf32>
    %157 = vector.multi_reduction <add>, %156, %cst_44 [0] : vector<16x64xf32> to vector<64xf32>
    %158 = vector.shape_cast %157 : vector<64xf32> to vector<1x64xf32>
    %159 = vector.extract_strided_slice %85 {offsets = [3, 0], sizes = [1, 64], strides = [1, 1]} : vector<16x64xf32> to vector<1x64xf32>
    %160 = vector.broadcast %159 : vector<1x64xf32> to vector<16x64xf32>
    %161 = arith.mulf %160, %91 : vector<16x64xf32>
    %162 = math.exp %161 : vector<16x64xf32>
    %163 = vector.extract_strided_slice %87 {offsets = [3, 0, 0], sizes = [1, 16, 1], strides = [1, 1, 1]} : vector<16x16x1xf32> to vector<1x16x1xf32>
    %164 = vector.shape_cast %163 : vector<1x16x1xf32> to vector<16x1xf32>
    %165 = vector.extract_strided_slice %90 {offsets = [3, 0], sizes = [1, 64], strides = [1, 1]} : vector<16x64xf32> to vector<1x64xf32>
    %166 = vector.broadcast %164 : vector<16x1xf32> to vector<16x64xf32>
    %167 = vector.broadcast %165 : vector<1x64xf32> to vector<16x64xf32>
    %168 = arith.mulf %166, %167 : vector<16x64xf32>
    %169 = arith.mulf %162, %148 : vector<16x64xf32>
    %170 = arith.addf %169, %168 : vector<16x64xf32>
    %171 = arith.truncf %170 : vector<16x64xf32> to vector<16x64xbf16>
    %c0_45 = arith.constant 0 : index
    %c3 = arith.constant 3 : index
    %c0_46 = arith.constant 0 : index
    %c0_47 = arith.constant 0 : index
    %172 = vector.load %arg10[%c0_45, %c3, %c0_46, %c0_47] : memref<2x8x16x64xbf16, #tpu.memory_space<vmem>>, vector<1x1x16x64xbf16>
    %173 = vector.shape_cast %172 : vector<1x1x16x64xbf16> to vector<16x64xbf16>
    %174 = vector.shape_cast %171 : vector<16x64xbf16> to vector<1x1x16x64xbf16>
    tpu.vector_store %arg10[%c0_45, %c3, %c0_46, %c0_47], %174 {strides = array<i32>} : memref<2x8x16x64xbf16, #tpu.memory_space<vmem>>, vector<1x1x16x64xbf16>,
    %175 = vector.extract_strided_slice %89 {offsets = [3, 0, 0], sizes = [1, 16, 1], strides = [1, 1, 1]} : vector<16x16x1xf32> to vector<1x16x1xf32>
    %176 = vector.shape_cast %175 : vector<1x16x1xf32> to vector<16x1xf32>
    %177 = vector.broadcast %176 : vector<16x1xf32> to vector<16x64xf32>
    %178 = arith.mulf %170, %177 : vector<16x64xf32>
    %cst_48 = arith.constant dense<0.000000e+00> : vector<64xf32>
    %179 = vector.multi_reduction <add>, %178, %cst_48 [0] : vector<16x64xf32> to vector<64xf32>
    %180 = vector.shape_cast %179 : vector<64xf32> to vector<1x64xf32>
    %181 = vector.extract_strided_slice %85 {offsets = [4, 0], sizes = [1, 64], strides = [1, 1]} : vector<16x64xf32> to vector<1x64xf32>
    %182 = vector.broadcast %181 : vector<1x64xf32> to vector<16x64xf32>
    %183 = arith.mulf %182, %91 : vector<16x64xf32>
    %184 = math.exp %183 : vector<16x64xf32>
    %185 = vector.extract_strided_slice %87 {offsets = [4, 0, 0], sizes = [1, 16, 1], strides = [1, 1, 1]} : vector<16x16x1xf32> to vector<1x16x1xf32>
    %186 = vector.shape_cast %185 : vector<1x16x1xf32> to vector<16x1xf32>
    %187 = vector.extract_strided_slice %90 {offsets = [4, 0], sizes = [1, 64], strides = [1, 1]} : vector<16x64xf32> to vector<1x64xf32>
    %188 = vector.broadcast %186 : vector<16x1xf32> to vector<16x64xf32>
    %189 = vector.broadcast %187 : vector<1x64xf32> to vector<16x64xf32>
    %190 = arith.mulf %188, %189 : vector<16x64xf32>
    %191 = arith.mulf %184, %170 : vector<16x64xf32>
    %192 = arith.addf %191, %190 : vector<16x64xf32>
    %193 = arith.truncf %192 : vector<16x64xf32> to vector<16x64xbf16>
    %c0_49 = arith.constant 0 : index
    %c4 = arith.constant 4 : index
    %c0_50 = arith.constant 0 : index
    %c0_51 = arith.constant 0 : index
    %194 = vector.load %arg10[%c0_49, %c4, %c0_50, %c0_51] : memref<2x8x16x64xbf16, #tpu.memory_space<vmem>>, vector<1x1x16x64xbf16>
    %195 = vector.shape_cast %194 : vector<1x1x16x64xbf16> to vector<16x64xbf16>
    %196 = vector.shape_cast %193 : vector<16x64xbf16> to vector<1x1x16x64xbf16>
    tpu.vector_store %arg10[%c0_49, %c4, %c0_50, %c0_51], %196 {strides = array<i32>} : memref<2x8x16x64xbf16, #tpu.memory_space<vmem>>, vector<1x1x16x64xbf16>,
    %197 = vector.extract_strided_slice %89 {offsets = [4, 0, 0], sizes = [1, 16, 1], strides = [1, 1, 1]} : vector<16x16x1xf32> to vector<1x16x1xf32>
    %198 = vector.shape_cast %197 : vector<1x16x1xf32> to vector<16x1xf32>
    %199 = vector.broadcast %198 : vector<16x1xf32> to vector<16x64xf32>
    %200 = arith.mulf %192, %199 : vector<16x64xf32>
    %cst_52 = arith.constant dense<0.000000e+00> : vector<64xf32>
    %201 = vector.multi_reduction <add>, %200, %cst_52 [0] : vector<16x64xf32> to vector<64xf32>
    %202 = vector.shape_cast %201 : vector<64xf32> to vector<1x64xf32>
    %203 = vector.extract_strided_slice %85 {offsets = [5, 0], sizes = [1, 64], strides = [1, 1]} : vector<16x64xf32> to vector<1x64xf32>
    %204 = vector.broadcast %203 : vector<1x64xf32> to vector<16x64xf32>
    %205 = arith.mulf %204, %91 : vector<16x64xf32>
    %206 = math.exp %205 : vector<16x64xf32>
    %207 = vector.extract_strided_slice %87 {offsets = [5, 0, 0], sizes = [1, 16, 1], strides = [1, 1, 1]} : vector<16x16x1xf32> to vector<1x16x1xf32>
    %208 = vector.shape_cast %207 : vector<1x16x1xf32> to vector<16x1xf32>
    %209 = vector.extract_strided_slice %90 {offsets = [5, 0], sizes = [1, 64], strides = [1, 1]} : vector<16x64xf32> to vector<1x64xf32>
    %210 = vector.broadcast %208 : vector<16x1xf32> to vector<16x64xf32>
    %211 = vector.broadcast %209 : vector<1x64xf32> to vector<16x64xf32>
    %212 = arith.mulf %210, %211 : vector<16x64xf32>
    %213 = arith.mulf %206, %192 : vector<16x64xf32>
    %214 = arith.addf %213, %212 : vector<16x64xf32>
    %215 = arith.truncf %214 : vector<16x64xf32> to vector<16x64xbf16>
    %c0_53 = arith.constant 0 : index
    %c5 = arith.constant 5 : index
    %c0_54 = arith.constant 0 : index
    %c0_55 = arith.constant 0 : index
    %216 = vector.load %arg10[%c0_53, %c5, %c0_54, %c0_55] : memref<2x8x16x64xbf16, #tpu.memory_space<vmem>>, vector<1x1x16x64xbf16>
    %217 = vector.shape_cast %216 : vector<1x1x16x64xbf16> to vector<16x64xbf16>
    %218 = vector.shape_cast %215 : vector<16x64xbf16> to vector<1x1x16x64xbf16>
    tpu.vector_store %arg10[%c0_53, %c5, %c0_54, %c0_55], %218 {strides = array<i32>} : memref<2x8x16x64xbf16, #tpu.memory_space<vmem>>, vector<1x1x16x64xbf16>,
    %219 = vector.extract_strided_slice %89 {offsets = [5, 0, 0], sizes = [1, 16, 1], strides = [1, 1, 1]} : vector<16x16x1xf32> to vector<1x16x1xf32>
    %220 = vector.shape_cast %219 : vector<1x16x1xf32> to vector<16x1xf32>
    %221 = vector.broadcast %220 : vector<16x1xf32> to vector<16x64xf32>
    %222 = arith.mulf %214, %221 : vector<16x64xf32>
    %cst_56 = arith.constant dense<0.000000e+00> : vector<64xf32>
    %223 = vector.multi_reduction <add>, %222, %cst_56 [0] : vector<16x64xf32> to vector<64xf32>
    %224 = vector.shape_cast %223 : vector<64xf32> to vector<1x64xf32>
    %225 = vector.extract_strided_slice %85 {offsets = [6, 0], sizes = [1, 64], strides = [1, 1]} : vector<16x64xf32> to vector<1x64xf32>
    %226 = vector.broadcast %225 : vector<1x64xf32> to vector<16x64xf32>
    %227 = arith.mulf %226, %91 : vector<16x64xf32>
    %228 = math.exp %227 : vector<16x64xf32>
    %229 = vector.extract_strided_slice %87 {offsets = [6, 0, 0], sizes = [1, 16, 1], strides = [1, 1, 1]} : vector<16x16x1xf32> to vector<1x16x1xf32>
    %230 = vector.shape_cast %229 : vector<1x16x1xf32> to vector<16x1xf32>
    %231 = vector.extract_strided_slice %90 {offsets = [6, 0], sizes = [1, 64], strides = [1, 1]} : vector<16x64xf32> to vector<1x64xf32>
    %232 = vector.broadcast %230 : vector<16x1xf32> to vector<16x64xf32>
    %233 = vector.broadcast %231 : vector<1x64xf32> to vector<16x64xf32>
    %234 = arith.mulf %232, %233 : vector<16x64xf32>
    %235 = arith.mulf %228, %214 : vector<16x64xf32>
    %236 = arith.addf %235, %234 : vector<16x64xf32>
    %237 = arith.truncf %236 : vector<16x64xf32> to vector<16x64xbf16>
    %c0_57 = arith.constant 0 : index
    %c6 = arith.constant 6 : index
    %c0_58 = arith.constant 0 : index
    %c0_59 = arith.constant 0 : index
    %238 = vector.load %arg10[%c0_57, %c6, %c0_58, %c0_59] : memref<2x8x16x64xbf16, #tpu.memory_space<vmem>>, vector<1x1x16x64xbf16>
    %239 = vector.shape_cast %238 : vector<1x1x16x64xbf16> to vector<16x64xbf16>
    %240 = vector.shape_cast %237 : vector<16x64xbf16> to vector<1x1x16x64xbf16>
    tpu.vector_store %arg10[%c0_57, %c6, %c0_58, %c0_59], %240 {strides = array<i32>} : memref<2x8x16x64xbf16, #tpu.memory_space<vmem>>, vector<1x1x16x64xbf16>,
    %241 = vector.extract_strided_slice %89 {offsets = [6, 0, 0], sizes = [1, 16, 1], strides = [1, 1, 1]} : vector<16x16x1xf32> to vector<1x16x1xf32>
    %242 = vector.shape_cast %241 : vector<1x16x1xf32> to vector<16x1xf32>
    %243 = vector.broadcast %242 : vector<16x1xf32> to vector<16x64xf32>
    %244 = arith.mulf %236, %243 : vector<16x64xf32>
    %cst_60 = arith.constant dense<0.000000e+00> : vector<64xf32>
    %245 = vector.multi_reduction <add>, %244, %cst_60 [0] : vector<16x64xf32> to vector<64xf32>
    %246 = vector.shape_cast %245 : vector<64xf32> to vector<1x64xf32>
    %247 = vector.extract_strided_slice %85 {offsets = [7, 0], sizes = [1, 64], strides = [1, 1]} : vector<16x64xf32> to vector<1x64xf32>
    %248 = vector.broadcast %247 : vector<1x64xf32> to vector<16x64xf32>
    %249 = arith.mulf %248, %91 : vector<16x64xf32>
    %250 = math.exp %249 : vector<16x64xf32>
    %251 = vector.extract_strided_slice %87 {offsets = [7, 0, 0], sizes = [1, 16, 1], strides = [1, 1, 1]} : vector<16x16x1xf32> to vector<1x16x1xf32>
    %252 = vector.shape_cast %251 : vector<1x16x1xf32> to vector<16x1xf32>
    %253 = vector.extract_strided_slice %90 {offsets = [7, 0], sizes = [1, 64], strides = [1, 1]} : vector<16x64xf32> to vector<1x64xf32>
    %254 = vector.broadcast %252 : vector<16x1xf32> to vector<16x64xf32>
    %255 = vector.broadcast %253 : vector<1x64xf32> to vector<16x64xf32>
    %256 = arith.mulf %254, %255 : vector<16x64xf32>
    %257 = arith.mulf %250, %236 : vector<16x64xf32>
    %258 = arith.addf %257, %256 : vector<16x64xf32>
    %259 = arith.truncf %258 : vector<16x64xf32> to vector<16x64xbf16>
    %c0_61 = arith.constant 0 : index
    %c7 = arith.constant 7 : index
    %c0_62 = arith.constant 0 : index
    %c0_63 = arith.constant 0 : index
    %260 = vector.load %arg10[%c0_61, %c7, %c0_62, %c0_63] : memref<2x8x16x64xbf16, #tpu.memory_space<vmem>>, vector<1x1x16x64xbf16>
    %261 = vector.shape_cast %260 : vector<1x1x16x64xbf16> to vector<16x64xbf16>
    %262 = vector.shape_cast %259 : vector<16x64xbf16> to vector<1x1x16x64xbf16>
    tpu.vector_store %arg10[%c0_61, %c7, %c0_62, %c0_63], %262 {strides = array<i32>} : memref<2x8x16x64xbf16, #tpu.memory_space<vmem>>, vector<1x1x16x64xbf16>,
    %263 = vector.extract_strided_slice %89 {offsets = [7, 0, 0], sizes = [1, 16, 1], strides = [1, 1, 1]} : vector<16x16x1xf32> to vector<1x16x1xf32>
    %264 = vector.shape_cast %263 : vector<1x16x1xf32> to vector<16x1xf32>
    %265 = vector.broadcast %264 : vector<16x1xf32> to vector<16x64xf32>
    %266 = arith.mulf %258, %265 : vector<16x64xf32>
    %cst_64 = arith.constant dense<0.000000e+00> : vector<64xf32>
    %267 = vector.multi_reduction <add>, %266, %cst_64 [0] : vector<16x64xf32> to vector<64xf32>
    %268 = vector.shape_cast %267 : vector<64xf32> to vector<1x64xf32>
    %cst_65 = arith.constant 0.000000e+00 : f32
    %269 = vector.broadcast %cst_65 : f32 to vector<16x64xf32>
    %270 = vector.extract_strided_slice %85 {offsets = [8, 0], sizes = [1, 64], strides = [1, 1]} : vector<16x64xf32> to vector<1x64xf32>
    %271 = vector.broadcast %270 : vector<1x64xf32> to vector<16x64xf32>
    %272 = arith.mulf %271, %91 : vector<16x64xf32>
    %273 = math.exp %272 : vector<16x64xf32>
    %274 = vector.extract_strided_slice %87 {offsets = [8, 0, 0], sizes = [1, 16, 1], strides = [1, 1, 1]} : vector<16x16x1xf32> to vector<1x16x1xf32>
    %275 = vector.shape_cast %274 : vector<1x16x1xf32> to vector<16x1xf32>
    %276 = vector.extract_strided_slice %90 {offsets = [8, 0], sizes = [1, 64], strides = [1, 1]} : vector<16x64xf32> to vector<1x64xf32>
    %277 = vector.broadcast %275 : vector<16x1xf32> to vector<16x64xf32>
    %278 = vector.broadcast %276 : vector<1x64xf32> to vector<16x64xf32>
    %279 = arith.mulf %277, %278 : vector<16x64xf32>
    %280 = arith.mulf %273, %269 : vector<16x64xf32>
    %281 = arith.addf %280, %279 : vector<16x64xf32>
    %282 = arith.truncf %281 : vector<16x64xf32> to vector<16x64xbf16>
    %c1_66 = arith.constant 1 : index
    %c0_67 = arith.constant 0 : index
    %c0_68 = arith.constant 0 : index
    %c0_69 = arith.constant 0 : index
    %283 = vector.load %arg10[%c1_66, %c0_67, %c0_68, %c0_69] : memref<2x8x16x64xbf16, #tpu.memory_space<vmem>>, vector<1x1x16x64xbf16>
    %284 = vector.shape_cast %283 : vector<1x1x16x64xbf16> to vector<16x64xbf16>
    %285 = vector.shape_cast %282 : vector<16x64xbf16> to vector<1x1x16x64xbf16>
    tpu.vector_store %arg10[%c1_66, %c0_67, %c0_68, %c0_69], %285 {strides = array<i32>} : memref<2x8x16x64xbf16, #tpu.memory_space<vmem>>, vector<1x1x16x64xbf16>,
    %286 = vector.extract_strided_slice %89 {offsets = [8, 0, 0], sizes = [1, 16, 1], strides = [1, 1, 1]} : vector<16x16x1xf32> to vector<1x16x1xf32>
    %287 = vector.shape_cast %286 : vector<1x16x1xf32> to vector<16x1xf32>
    %288 = vector.broadcast %287 : vector<16x1xf32> to vector<16x64xf32>
    %289 = arith.mulf %281, %288 : vector<16x64xf32>
    %cst_70 = arith.constant dense<0.000000e+00> : vector<64xf32>
    %290 = vector.multi_reduction <add>, %289, %cst_70 [0] : vector<16x64xf32> to vector<64xf32>
    %291 = vector.shape_cast %290 : vector<64xf32> to vector<1x64xf32>
    %292 = vector.extract_strided_slice %85 {offsets = [9, 0], sizes = [1, 64], strides = [1, 1]} : vector<16x64xf32> to vector<1x64xf32>
    %293 = vector.broadcast %292 : vector<1x64xf32> to vector<16x64xf32>
    %294 = arith.mulf %293, %91 : vector<16x64xf32>
    %295 = math.exp %294 : vector<16x64xf32>
    %296 = vector.extract_strided_slice %87 {offsets = [9, 0, 0], sizes = [1, 16, 1], strides = [1, 1, 1]} : vector<16x16x1xf32> to vector<1x16x1xf32>
    %297 = vector.shape_cast %296 : vector<1x16x1xf32> to vector<16x1xf32>
    %298 = vector.extract_strided_slice %90 {offsets = [9, 0], sizes = [1, 64], strides = [1, 1]} : vector<16x64xf32> to vector<1x64xf32>
    %299 = vector.broadcast %297 : vector<16x1xf32> to vector<16x64xf32>
    %300 = vector.broadcast %298 : vector<1x64xf32> to vector<16x64xf32>
    %301 = arith.mulf %299, %300 : vector<16x64xf32>
    %302 = arith.mulf %295, %281 : vector<16x64xf32>
    %303 = arith.addf %302, %301 : vector<16x64xf32>
    %304 = arith.truncf %303 : vector<16x64xf32> to vector<16x64xbf16>
    %c1_71 = arith.constant 1 : index
    %c1_72 = arith.constant 1 : index
    %c0_73 = arith.constant 0 : index
    %c0_74 = arith.constant 0 : index
    %305 = vector.load %arg10[%c1_71, %c1_72, %c0_73, %c0_74] : memref<2x8x16x64xbf16, #tpu.memory_space<vmem>>, vector<1x1x16x64xbf16>
    %306 = vector.shape_cast %305 : vector<1x1x16x64xbf16> to vector<16x64xbf16>
    %307 = vector.shape_cast %304 : vector<16x64xbf16> to vector<1x1x16x64xbf16>
    tpu.vector_store %arg10[%c1_71, %c1_72, %c0_73, %c0_74], %307 {strides = array<i32>} : memref<2x8x16x64xbf16, #tpu.memory_space<vmem>>, vector<1x1x16x64xbf16>,
    %308 = vector.extract_strided_slice %89 {offsets = [9, 0, 0], sizes = [1, 16, 1], strides = [1, 1, 1]} : vector<16x16x1xf32> to vector<1x16x1xf32>
    %309 = vector.shape_cast %308 : vector<1x16x1xf32> to vector<16x1xf32>
    %310 = vector.broadcast %309 : vector<16x1xf32> to vector<16x64xf32>
    %311 = arith.mulf %303, %310 : vector<16x64xf32>
    %cst_75 = arith.constant dense<0.000000e+00> : vector<64xf32>
    %312 = vector.multi_reduction <add>, %311, %cst_75 [0] : vector<16x64xf32> to vector<64xf32>
    %313 = vector.shape_cast %312 : vector<64xf32> to vector<1x64xf32>
    %314 = vector.extract_strided_slice %85 {offsets = [10, 0], sizes = [1, 64], strides = [1, 1]} : vector<16x64xf32> to vector<1x64xf32>
    %315 = vector.broadcast %314 : vector<1x64xf32> to vector<16x64xf32>
    %316 = arith.mulf %315, %91 : vector<16x64xf32>
    %317 = math.exp %316 : vector<16x64xf32>
    %318 = vector.extract_strided_slice %87 {offsets = [10, 0, 0], sizes = [1, 16, 1], strides = [1, 1, 1]} : vector<16x16x1xf32> to vector<1x16x1xf32>
    %319 = vector.shape_cast %318 : vector<1x16x1xf32> to vector<16x1xf32>
    %320 = vector.extract_strided_slice %90 {offsets = [10, 0], sizes = [1, 64], strides = [1, 1]} : vector<16x64xf32> to vector<1x64xf32>
    %321 = vector.broadcast %319 : vector<16x1xf32> to vector<16x64xf32>
    %322 = vector.broadcast %320 : vector<1x64xf32> to vector<16x64xf32>
    %323 = arith.mulf %321, %322 : vector<16x64xf32>
    %324 = arith.mulf %317, %303 : vector<16x64xf32>
    %325 = arith.addf %324, %323 : vector<16x64xf32>
    %326 = arith.truncf %325 : vector<16x64xf32> to vector<16x64xbf16>
    %c1_76 = arith.constant 1 : index
    %c2_77 = arith.constant 2 : index
    %c0_78 = arith.constant 0 : index
    %c0_79 = arith.constant 0 : index
    %327 = vector.load %arg10[%c1_76, %c2_77, %c0_78, %c0_79] : memref<2x8x16x64xbf16, #tpu.memory_space<vmem>>, vector<1x1x16x64xbf16>
    %328 = vector.shape_cast %327 : vector<1x1x16x64xbf16> to vector<16x64xbf16>
    %329 = vector.shape_cast %326 : vector<16x64xbf16> to vector<1x1x16x64xbf16>
    tpu.vector_store %arg10[%c1_76, %c2_77, %c0_78, %c0_79], %329 {strides = array<i32>} : memref<2x8x16x64xbf16, #tpu.memory_space<vmem>>, vector<1x1x16x64xbf16>,
    %330 = vector.extract_strided_slice %89 {offsets = [10, 0, 0], sizes = [1, 16, 1], strides = [1, 1, 1]} : vector<16x16x1xf32> to vector<1x16x1xf32>
    %331 = vector.shape_cast %330 : vector<1x16x1xf32> to vector<16x1xf32>
    %332 = vector.broadcast %331 : vector<16x1xf32> to vector<16x64xf32>
    %333 = arith.mulf %325, %332 : vector<16x64xf32>
    %cst_80 = arith.constant dense<0.000000e+00> : vector<64xf32>
    %334 = vector.multi_reduction <add>, %333, %cst_80 [0] : vector<16x64xf32> to vector<64xf32>
    %335 = vector.shape_cast %334 : vector<64xf32> to vector<1x64xf32>
    %336 = vector.extract_strided_slice %85 {offsets = [11, 0], sizes = [1, 64], strides = [1, 1]} : vector<16x64xf32> to vector<1x64xf32>
    %337 = vector.broadcast %336 : vector<1x64xf32> to vector<16x64xf32>
    %338 = arith.mulf %337, %91 : vector<16x64xf32>
    %339 = math.exp %338 : vector<16x64xf32>
    %340 = vector.extract_strided_slice %87 {offsets = [11, 0, 0], sizes = [1, 16, 1], strides = [1, 1, 1]} : vector<16x16x1xf32> to vector<1x16x1xf32>
    %341 = vector.shape_cast %340 : vector<1x16x1xf32> to vector<16x1xf32>
    %342 = vector.extract_strided_slice %90 {offsets = [11, 0], sizes = [1, 64], strides = [1, 1]} : vector<16x64xf32> to vector<1x64xf32>
    %343 = vector.broadcast %341 : vector<16x1xf32> to vector<16x64xf32>
    %344 = vector.broadcast %342 : vector<1x64xf32> to vector<16x64xf32>
    %345 = arith.mulf %343, %344 : vector<16x64xf32>
    %346 = arith.mulf %339, %325 : vector<16x64xf32>
    %347 = arith.addf %346, %345 : vector<16x64xf32>
    %348 = arith.truncf %347 : vector<16x64xf32> to vector<16x64xbf16>
    %c1_81 = arith.constant 1 : index
    %c3_82 = arith.constant 3 : index
    %c0_83 = arith.constant 0 : index
    %c0_84 = arith.constant 0 : index
    %349 = vector.load %arg10[%c1_81, %c3_82, %c0_83, %c0_84] : memref<2x8x16x64xbf16, #tpu.memory_space<vmem>>, vector<1x1x16x64xbf16>
    %350 = vector.shape_cast %349 : vector<1x1x16x64xbf16> to vector<16x64xbf16>
    %351 = vector.shape_cast %348 : vector<16x64xbf16> to vector<1x1x16x64xbf16>
    tpu.vector_store %arg10[%c1_81, %c3_82, %c0_83, %c0_84], %351 {strides = array<i32>} : memref<2x8x16x64xbf16, #tpu.memory_space<vmem>>, vector<1x1x16x64xbf16>,
    %352 = vector.extract_strided_slice %89 {offsets = [11, 0, 0], sizes = [1, 16, 1], strides = [1, 1, 1]} : vector<16x16x1xf32> to vector<1x16x1xf32>
    %353 = vector.shape_cast %352 : vector<1x16x1xf32> to vector<16x1xf32>
    %354 = vector.broadcast %353 : vector<16x1xf32> to vector<16x64xf32>
    %355 = arith.mulf %347, %354 : vector<16x64xf32>
    %cst_85 = arith.constant dense<0.000000e+00> : vector<64xf32>
    %356 = vector.multi_reduction <add>, %355, %cst_85 [0] : vector<16x64xf32> to vector<64xf32>
    %357 = vector.shape_cast %356 : vector<64xf32> to vector<1x64xf32>
    %358 = vector.extract_strided_slice %85 {offsets = [12, 0], sizes = [1, 64], strides = [1, 1]} : vector<16x64xf32> to vector<1x64xf32>
    %359 = vector.broadcast %358 : vector<1x64xf32> to vector<16x64xf32>
    %360 = arith.mulf %359, %91 : vector<16x64xf32>
    %361 = math.exp %360 : vector<16x64xf32>
    %362 = vector.extract_strided_slice %87 {offsets = [12, 0, 0], sizes = [1, 16, 1], strides = [1, 1, 1]} : vector<16x16x1xf32> to vector<1x16x1xf32>
    %363 = vector.shape_cast %362 : vector<1x16x1xf32> to vector<16x1xf32>
    %364 = vector.extract_strided_slice %90 {offsets = [12, 0], sizes = [1, 64], strides = [1, 1]} : vector<16x64xf32> to vector<1x64xf32>
    %365 = vector.broadcast %363 : vector<16x1xf32> to vector<16x64xf32>
    %366 = vector.broadcast %364 : vector<1x64xf32> to vector<16x64xf32>
    %367 = arith.mulf %365, %366 : vector<16x64xf32>
    %368 = arith.mulf %361, %347 : vector<16x64xf32>
    %369 = arith.addf %368, %367 : vector<16x64xf32>
    %370 = arith.truncf %369 : vector<16x64xf32> to vector<16x64xbf16>
    %c1_86 = arith.constant 1 : index
    %c4_87 = arith.constant 4 : index
    %c0_88 = arith.constant 0 : index
    %c0_89 = arith.constant 0 : index
    %371 = vector.load %arg10[%c1_86, %c4_87, %c0_88, %c0_89] : memref<2x8x16x64xbf16, #tpu.memory_space<vmem>>, vector<1x1x16x64xbf16>
    %372 = vector.shape_cast %371 : vector<1x1x16x64xbf16> to vector<16x64xbf16>
    %373 = vector.shape_cast %370 : vector<16x64xbf16> to vector<1x1x16x64xbf16>
    tpu.vector_store %arg10[%c1_86, %c4_87, %c0_88, %c0_89], %373 {strides = array<i32>} : memref<2x8x16x64xbf16, #tpu.memory_space<vmem>>, vector<1x1x16x64xbf16>,
    %374 = vector.extract_strided_slice %89 {offsets = [12, 0, 0], sizes = [1, 16, 1], strides = [1, 1, 1]} : vector<16x16x1xf32> to vector<1x16x1xf32>
    %375 = vector.shape_cast %374 : vector<1x16x1xf32> to vector<16x1xf32>
    %376 = vector.broadcast %375 : vector<16x1xf32> to vector<16x64xf32>
    %377 = arith.mulf %369, %376 : vector<16x64xf32>
    %cst_90 = arith.constant dense<0.000000e+00> : vector<64xf32>
    %378 = vector.multi_reduction <add>, %377, %cst_90 [0] : vector<16x64xf32> to vector<64xf32>
    %379 = vector.shape_cast %378 : vector<64xf32> to vector<1x64xf32>
    %380 = vector.extract_strided_slice %85 {offsets = [13, 0], sizes = [1, 64], strides = [1, 1]} : vector<16x64xf32> to vector<1x64xf32>
    %381 = vector.broadcast %380 : vector<1x64xf32> to vector<16x64xf32>
    %382 = arith.mulf %381, %91 : vector<16x64xf32>
    %383 = math.exp %382 : vector<16x64xf32>
    %384 = vector.extract_strided_slice %87 {offsets = [13, 0, 0], sizes = [1, 16, 1], strides = [1, 1, 1]} : vector<16x16x1xf32> to vector<1x16x1xf32>
    %385 = vector.shape_cast %384 : vector<1x16x1xf32> to vector<16x1xf32>
    %386 = vector.extract_strided_slice %90 {offsets = [13, 0], sizes = [1, 64], strides = [1, 1]} : vector<16x64xf32> to vector<1x64xf32>
    %387 = vector.broadcast %385 : vector<16x1xf32> to vector<16x64xf32>
    %388 = vector.broadcast %386 : vector<1x64xf32> to vector<16x64xf32>
    %389 = arith.mulf %387, %388 : vector<16x64xf32>
    %390 = arith.mulf %383, %369 : vector<16x64xf32>
    %391 = arith.addf %390, %389 : vector<16x64xf32>
    %392 = arith.truncf %391 : vector<16x64xf32> to vector<16x64xbf16>
    %c1_91 = arith.constant 1 : index
    %c5_92 = arith.constant 5 : index
    %c0_93 = arith.constant 0 : index
    %c0_94 = arith.constant 0 : index
    %393 = vector.load %arg10[%c1_91, %c5_92, %c0_93, %c0_94] : memref<2x8x16x64xbf16, #tpu.memory_space<vmem>>, vector<1x1x16x64xbf16>
    %394 = vector.shape_cast %393 : vector<1x1x16x64xbf16> to vector<16x64xbf16>
    %395 = vector.shape_cast %392 : vector<16x64xbf16> to vector<1x1x16x64xbf16>
    tpu.vector_store %arg10[%c1_91, %c5_92, %c0_93, %c0_94], %395 {strides = array<i32>} : memref<2x8x16x64xbf16, #tpu.memory_space<vmem>>, vector<1x1x16x64xbf16>,
    %396 = vector.extract_strided_slice %89 {offsets = [13, 0, 0], sizes = [1, 16, 1], strides = [1, 1, 1]} : vector<16x16x1xf32> to vector<1x16x1xf32>
    %397 = vector.shape_cast %396 : vector<1x16x1xf32> to vector<16x1xf32>
    %398 = vector.broadcast %397 : vector<16x1xf32> to vector<16x64xf32>
    %399 = arith.mulf %391, %398 : vector<16x64xf32>
    %cst_95 = arith.constant dense<0.000000e+00> : vector<64xf32>
    %400 = vector.multi_reduction <add>, %399, %cst_95 [0] : vector<16x64xf32> to vector<64xf32>
    %401 = vector.shape_cast %400 : vector<64xf32> to vector<1x64xf32>
    %402 = vector.extract_strided_slice %85 {offsets = [14, 0], sizes = [1, 64], strides = [1, 1]} : vector<16x64xf32> to vector<1x64xf32>
    %403 = vector.broadcast %402 : vector<1x64xf32> to vector<16x64xf32>
    %404 = arith.mulf %403, %91 : vector<16x64xf32>
    %405 = math.exp %404 : vector<16x64xf32>
    %406 = vector.extract_strided_slice %87 {offsets = [14, 0, 0], sizes = [1, 16, 1], strides = [1, 1, 1]} : vector<16x16x1xf32> to vector<1x16x1xf32>
    %407 = vector.shape_cast %406 : vector<1x16x1xf32> to vector<16x1xf32>
    %408 = vector.extract_strided_slice %90 {offsets = [14, 0], sizes = [1, 64], strides = [1, 1]} : vector<16x64xf32> to vector<1x64xf32>
    %409 = vector.broadcast %407 : vector<16x1xf32> to vector<16x64xf32>
    %410 = vector.broadcast %408 : vector<1x64xf32> to vector<16x64xf32>
    %411 = arith.mulf %409, %410 : vector<16x64xf32>
    %412 = arith.mulf %405, %391 : vector<16x64xf32>
    %413 = arith.addf %412, %411 : vector<16x64xf32>
    %414 = arith.truncf %413 : vector<16x64xf32> to vector<16x64xbf16>
    %c1_96 = arith.constant 1 : index
    %c6_97 = arith.constant 6 : index
    %c0_98 = arith.constant 0 : index
    %c0_99 = arith.constant 0 : index
    %415 = vector.load %arg10[%c1_96, %c6_97, %c0_98, %c0_99] : memref<2x8x16x64xbf16, #tpu.memory_space<vmem>>, vector<1x1x16x64xbf16>
    %416 = vector.shape_cast %415 : vector<1x1x16x64xbf16> to vector<16x64xbf16>
    %417 = vector.shape_cast %414 : vector<16x64xbf16> to vector<1x1x16x64xbf16>
    tpu.vector_store %arg10[%c1_96, %c6_97, %c0_98, %c0_99], %417 {strides = array<i32>} : memref<2x8x16x64xbf16, #tpu.memory_space<vmem>>, vector<1x1x16x64xbf16>,
    %418 = vector.extract_strided_slice %89 {offsets = [14, 0, 0], sizes = [1, 16, 1], strides = [1, 1, 1]} : vector<16x16x1xf32> to vector<1x16x1xf32>
    %419 = vector.shape_cast %418 : vector<1x16x1xf32> to vector<16x1xf32>
    %420 = vector.broadcast %419 : vector<16x1xf32> to vector<16x64xf32>
    %421 = arith.mulf %413, %420 : vector<16x64xf32>
    %cst_100 = arith.constant dense<0.000000e+00> : vector<64xf32>
    %422 = vector.multi_reduction <add>, %421, %cst_100 [0] : vector<16x64xf32> to vector<64xf32>
    %423 = vector.shape_cast %422 : vector<64xf32> to vector<1x64xf32>
    %424 = vector.extract_strided_slice %85 {offsets = [15, 0], sizes = [1, 64], strides = [1, 1]} : vector<16x64xf32> to vector<1x64xf32>
    %425 = vector.broadcast %424 : vector<1x64xf32> to vector<16x64xf32>
    %426 = arith.mulf %425, %91 : vector<16x64xf32>
    %427 = math.exp %426 : vector<16x64xf32>
    %428 = vector.extract_strided_slice %87 {offsets = [15, 0, 0], sizes = [1, 16, 1], strides = [1, 1, 1]} : vector<16x16x1xf32> to vector<1x16x1xf32>
    %429 = vector.shape_cast %428 : vector<1x16x1xf32> to vector<16x1xf32>
    %430 = vector.extract_strided_slice %90 {offsets = [15, 0], sizes = [1, 64], strides = [1, 1]} : vector<16x64xf32> to vector<1x64xf32>
    %431 = vector.broadcast %429 : vector<16x1xf32> to vector<16x64xf32>
    %432 = vector.broadcast %430 : vector<1x64xf32> to vector<16x64xf32>
    %433 = arith.mulf %431, %432 : vector<16x64xf32>
    %434 = arith.mulf %427, %413 : vector<16x64xf32>
    %435 = arith.addf %434, %433 : vector<16x64xf32>
    %436 = arith.truncf %435 : vector<16x64xf32> to vector<16x64xbf16>
    %c1_101 = arith.constant 1 : index
    %c7_102 = arith.constant 7 : index
    %c0_103 = arith.constant 0 : index
    %c0_104 = arith.constant 0 : index
    %437 = vector.load %arg10[%c1_101, %c7_102, %c0_103, %c0_104] : memref<2x8x16x64xbf16, #tpu.memory_space<vmem>>, vector<1x1x16x64xbf16>
    %438 = vector.shape_cast %437 : vector<1x1x16x64xbf16> to vector<16x64xbf16>
    %439 = vector.shape_cast %436 : vector<16x64xbf16> to vector<1x1x16x64xbf16>
    tpu.vector_store %arg10[%c1_101, %c7_102, %c0_103, %c0_104], %439 {strides = array<i32>} : memref<2x8x16x64xbf16, #tpu.memory_space<vmem>>, vector<1x1x16x64xbf16>,
    %440 = vector.extract_strided_slice %89 {offsets = [15, 0, 0], sizes = [1, 16, 1], strides = [1, 1, 1]} : vector<16x16x1xf32> to vector<1x16x1xf32>
    %441 = vector.shape_cast %440 : vector<1x16x1xf32> to vector<16x1xf32>
    %442 = vector.broadcast %441 : vector<16x1xf32> to vector<16x64xf32>
    %443 = arith.mulf %435, %442 : vector<16x64xf32>
    %cst_105 = arith.constant dense<0.000000e+00> : vector<64xf32>
    %444 = vector.multi_reduction <add>, %443, %cst_105 [0] : vector<16x64xf32> to vector<64xf32>
    %445 = vector.shape_cast %444 : vector<64xf32> to vector<1x64xf32>
    %446 = tpu.concatenate %114, %136, %158, %180, %202, %224, %246, %268, %291, %313, %335, %357, %379, %401, %423, %445 in 0 : vector<1x64xf32>, vector<1x64xf32>, vector<1x64xf32>, vector<1x64xf32>, vector<1x64xf32>, vector<1x64xf32>, vector<1x64xf32>, vector<1x64xf32>, vector<1x64xf32>, vector<1x64xf32>, vector<1x64xf32>, vector<1x64xf32>, vector<1x64xf32>, vector<1x64xf32>, vector<1x64xf32>, vector<1x64xf32> -> vector<16x64xf32>
    %c0_106 = arith.constant 0 : index
    %c0_107 = arith.constant 0 : index
    %447 = vector.load %arg7[%c0_106, %c0_107] : memref<1x64xf32, #tpu.memory_space<vmem>>, vector<1x64xf32>
    %448 = vector.broadcast %447 : vector<1x64xf32> to vector<16x64xf32>
    %449 = arith.mulf %448, %71 : vector<16x64xf32>
    %450 = arith.addf %446, %449 : vector<16x64xf32>
    %451 = arith.negf %4 : vector<16x64xf32>
    %452 = math.exp %451 : vector<16x64xf32>
    %cst_108 = arith.constant 1.000000e+00 : f32
    %453 = vector.broadcast %cst_108 : f32 to vector<16x64xf32>
    %454 = arith.addf %453, %452 : vector<16x64xf32>
    %455 = arith.divf %453, %454 : vector<16x64xf32>
    %456 = arith.mulf %4, %455 : vector<16x64xf32>
    %457 = arith.mulf %450, %456 : vector<16x64xf32>
    %458 = arith.truncf %457 : vector<16x64xf32> to vector<16x64xbf16>
    %c0_109 = arith.constant 0 : index
    %c0_110 = arith.constant 0 : index
    %459 = vector.load %arg8[%c0_109, %c0_110] : memref<64x32xbf16, #tpu.memory_space<vmem>>, vector<64x32xbf16>
    %cst_111 = arith.constant dense<0.000000e+00> : vector<16x32xf32>
    %460 = tpu.matmul %458, %459, %cst_111 {dimension_numbers = #tpu.dot_dimension_numbers<[1], [0], [0], [1], [0, 0, 1, 1], [], []>} : vector<16x64xbf16>, vector<64x32xbf16>, vector<16x32xf32> -> vector<16x32xf32>
    %c0_112 = arith.constant 0 : index
    %c0_113 = arith.constant 0 : index
    %461 = vector.load %arg9[%c0_112, %c0_113] : memref<16x32xf32, #tpu.memory_space<vmem>>, vector<16x32xf32>
    tpu.vector_store %arg9[%c0_112, %c0_113], %460 {strides = array<i32>} : memref<16x32xf32, #tpu.memory_space<vmem>>, vector<16x32xf32>,
    return
  }
}

</mosaic_0001>

<bundles_post_ra>
// kernel: mamba_block_forward.1
= control target key start
LH: loop header
LB: loop body
LE: loop exit
PB: predicated region body
PF: predicated region fallthrough
CT: control target
= control target key end

     0   :  { %v2655_v1 = vmov 0.0   ;;  %vm1780_vm0 = vmmov 0   ;;  %vm60_vm1 = vcmask 261120   ;;  %s2643_s0 = inlined_call_operand.vmem [shape: bf16[16,32], index: 0, kind: input, shape index: {}]   ;;  %s2644_s1 = inlined_call_operand.vmem [shape: bf16[32,128], index: 1, kind: input, shape index: {}]   ;;  %s2645_s2 = inlined_call_operand.vmem [shape: f32[4,64], index: 2, kind: input, shape index: {}]   ;;  %s2646_s3 = inlined_call_operand.vmem [shape: f32[1,64], index: 3, kind: input, shape index: {}]   ;;  %s2647_s4 = inlined_call_operand.vmem [shape: bf16[64,96], index: 4, kind: input, shape index: {}]   ;;  %s2648_s5 = inlined_call_operand.vmem [shape: f32[1,64], index: 5, kind: input, shape index: {}]   ;;  %s2649_s6 = inlined_call_operand.vmem [shape: f32[16,64], index: 6, kind: input, shape index: {}]   ;;  %s2650_s7 = inlined_call_operand.vmem [shape: f32[1,64], index: 7, kind: input, shape index: {}]   ;;  %s2651_s8 = inlined_call_operand.vmem [shape: bf16[64,32], index: 8, kind: input, shape index: {}]   ;;  %s2652_s9 = inlined_call_operand.hbm [shape: f32[16,32], index: 9, kind: output, shape index: {0}]   ;;  %s2653_s10 = inlined_call_operand.vmem [shape: bf16[2,8,16,64], index: 10, kind: output, shape index: {1}]   ;;  %s2654_s11 = inlined_call_operand.vmem [shape: f32[2,3,64], index: 11, kind: output, shape index: {2}]  }
   0x1   :  { %v1656_v0 = vld [vmem:[%s2644_s1] sm:$0xff]   ;;  %1618 = vmatprep.subr.bf16.mxu0 %v2655_v1  ;;  %1626 = vmatprep.subr.bf16.mxu1 %v2655_v1  ;;  %v1657_v2 = vld [vmem:[%s2644_s1 + $0x8] sm:$0xff]  }
   0x2   :  { %1619 = vmatpush3.bf16.msra.mxu0 %v1656_v0  ;;  %1622 = vmatprep.mubr.msk.bf16.mxu0 %vm1780_vm0, %v2655_v1  ;;  %v1658_v3 = vld [vmem:[%s2643_s0] sm:$0xff]  }
   0x3   :  { %1620 = vmatprep.subr.bf16.mxu0 %v2655_v1  ;;  %1634 = vmatprep.mubr.msk.bf16.mxu1 %vm1780_vm0, %v2655_v1 }
   0x6   :  { %1621 = vmatpush3.bf16.msra.mxu0 %v1657_v2 }
   0x7   :  { %1638 = vmatprep.subr.bf16.mxu0 %v2655_v1 }
   0x8   :  { %17 = vsyncpa [#allocation3], 0  ;;  %v1659_v4 = vld [vmem:[%s2647_s4] sm:$0xff]   ;;  %v1660_v5 = vld [vmem:[%s2647_s4 + $0x8] sm:$0xff]   ;;  %v120_v8 = vlaneseq  ;;  %vm105_vm2 = vcmask 523269   ;;  %vm112_vm3 = vcmask 1042432  }
   0x9   :  { %1623 = vmatmul.mubr.msk.bf16.vlgmr.msra.gmra.mrb[0].mxu0 %vm60_vm1, %v1658_v3  ;;  %1627 = vmatpush3.bf16.msra.mxu1 %v1659_v4  ;;  %v1661_v6 = vld [vmem:[%s2647_s4 + $0x10] sm:$0xff]   ;;  %v1662_v7 = vld [vmem:[%s2647_s4 + $0x18] sm:$0xff]   ;;  %v109_v13 = vld [vmem:[%s2645_s2] sm:$0xf]  ;;  %vm186_vm7 = vcmask 1046528   ;;  %vm210_vm8 = vcmask 1045504  }
   0xa   :  { %1646 = vmatprep.mubr.msk.bf16.mxu0 %vm1780_vm0, %v2655_v1  ;;  %1628 = vmatprep.subr.bf16.mxu1 %v2655_v1  ;;  %v1877_v9 = vshrl.u32 %v120_v8, 7  ;;  %v1494_v36 = vld [vmem:[%s2646_s3] ss:$0 sm:$0xff]  ;;  %vm269_vm12 = vcmask 523264   ;;  %vm689_vm15 = vcmask 519168   ;;  %s1781_s22 = smov 64  }
   0xb   :  { %vm1333_vm0 = vcmask 1040384  }
   0xc   :  { %v1880_v10 = vsub.s32 3, %v1877_v9  ;;  %v1883_v11 = vsub.s32 0, %v1877_v9  ;;  %v122_v12 = vadd.s32 8, %v1877_v9  ;;  %v1890_v14 = vsub.s32 1, %v1877_v9 }
   0xd   :  { %1629 = vmatpush3.bf16.msra.mxu1 %v1660_v5  ;;  %v1893_v15 = vsub.s32 2, %v1877_v9  ;;  %v127_v16 = vand.u32 7, %v1877_v9 }
   0xe   :  { %1630 = vmatprep.subr.bf16.mxu1 %v2655_v1  ;;  %v151_v18 = vrot.slane %v109_v13, %v1880_v10  ;;  %v167_v19 = vrot.slane %v109_v13, %v1883_v11  ;;  %v134_v20 = vand.u32 7, %v122_v12  ;;  %v179_v22 = vrot.slane %v109_v13, %v1890_v14 }
   0xf   :  { %v203_v23 = vrot.slane %v109_v13, %v1893_v15  ;;  %vm162_vm4 = vcmp.ge.s32.totalorder %v127_v16, 3  ;;  %vm174_vm9 = vcmp.ge.s32.totalorder %v127_v16, 2  ;;  %vm198_vm10 = vcmp.ge.s32.totalorder %v127_v16, 1 }
  0x10   :  { %vm163_vm5 = vcmp.ge.s32.totalorder %v134_v20, 3  ;;  %vm175_vm6 = vcmp.ge.s32.totalorder %v134_v20, 2  ;;  %vm199_vm11 = vcmp.ge.s32.totalorder %v134_v20, 1 }
  0x11   :  { %1631 = vmatpush3.bf16.msra.mxu1 %v1661_v6 }
  0x12   :  { %1632 = vmatprep.subr.bf16.mxu1 %v2655_v1 }
  0x15   :  { %1633 = vmatpush3.bf16.msra.mxu1 %v1662_v7 }
  0xdc   :  { %v1896_v17 = vpop.f32.mrb[0].mxu0 }
  0xdd   :  { %106 = vst.msk [vmem:[%s2654_s11 - $0x5] sm:$0xe0] %vm105_vm2, %v1896_v17  ;;  %v113_v21 = vrot.slane %v1896_v17, 5  ;;  %v1624_v24 = vpop.f32.mrb[1].mxu0  ;;  %v152_v29 = vmul.f32 %v151_v18, %v1896_v17 }
  0xde   :  { %v1907_v25 = vpop.f32.mrb[2].mxu0 }
  0xdf   :  { %v119_v26 = vsel %vm112_vm3, 0.0, %v113_v21  ;;  %1493 = vst.msk [vmem:[%s2654_s11 - $0x1] sm:$0xe0] %vm105_vm2, %v1907_v25  ;;  %v114_v27 = vrot.slane %v1907_v25, 5  ;;  %v1625_v28 = vpop.f32.mrb[3].mxu0  ;;  %v153_v31 = vmul.f32 %v151_v18, %v1907_v25  ;;  %v160_v45 = vadd.f32 %v1494_v36, %v152_v29 }
  0xe0   :  { %v168_v30 = vmul.f32 %v167_v19, %v119_v26  ;;  %v180_v32 = vmul.f32 %v179_v22, %v119_v26  ;;  %v204_v37 = vmul.f32 %v203_v23, %v119_v26  ;;  %vm1335_vm2 = vcmask 1041408  }
  0xe1   :  { %v115_v33 = vsel %vm112_vm3, %v113_v21, %v114_v27  ;;  %v182_v34 = vmul.f32 %v179_v22, %v114_v27  ;;  %v206_v35 = vmul.f32 %v203_v23, %v114_v27  ;;  %v161_v42 = vadd.f32 %v1494_v36, %v153_v31 }
  0xe2   :  { %v169_v38 = vmul.f32 %v167_v19, %v115_v33  ;;  %v181_v39 = vmul.f32 %v179_v22, %v115_v33  ;;  %v170_v41 = vsel %vm162_vm4, %v168_v30, 0.0  ;;  %v205_v43 = vmul.f32 %v203_v23, %v115_v33  ;;  %v1502_v19 = vld [vmem:[%s2648_s5] ss:$0 sm:$0xff] }
  0xe3   :  { %v190_v40 = vrot.slane %v182_v34, 1  ;;  %v214_v44 = vrot.slane %v206_v35, 2  ;;  %v187_v46 = vrot.slane %v180_v32, 1  ;;  %v211_v49 = vrot.slane %v204_v37, 2 }
  0xe4   :  { %v171_v47 = vsel %vm163_vm5, %v169_v38, 0.0  ;;  %v188_v48 = vrot.slane %v181_v39, 1  ;;  %v212_v51 = vrot.slane %v205_v43, 2  ;;  %v172_v52 = vadd.f32 %v170_v41, %v160_v45 }
  0xe5   :  { %v173_v50 = vadd.f32 %v171_v47, %v161_v42  ;;  %v1947_v30 = vsub.s32 4, %v1877_v9  ;;  %v1950_v31 = vsub.s32 5, %v1877_v9  ;;  %v1953_v32 = vsub.s32 6, %v1877_v9 }
  0xe6   :  { %v191_v53 = vsel %vm186_vm7, %v188_v48, %v190_v40  ;;  %v189_v54 = vsel %vm186_vm7, %v187_v46, %v188_v48  ;;  %v213_v57 = vsel %vm210_vm8, %v211_v49, %v212_v51  ;;  %v215_v58 = vsel %vm210_vm8, %v212_v51, %v214_v44 }
  0xe7   :  { %v195_v55 = vsel %vm175_vm6, %v191_v53, 0.0  ;;  %v194_v56 = vsel %vm174_vm9, %v189_v54, 0.0  ;;  %v218_v61 = vsel %vm198_vm10, %v213_v57, 0.0  ;;  %v219_v62 = vsel %vm199_vm11, %v215_v58, 0.0 }
  0xe8   :  { %v197_v59 = vadd.f32 %v195_v55, %v173_v50  ;;  %v196_v60 = vadd.f32 %v194_v56, %v172_v52  ;;  %v1956_v33 = vsub.s32 7, %v1877_v9  ;;  %vm1338_vm4 = vcmask 1043456  }
  0xe9   :  { %vm1340_vm5 = vcmask 1044480  }
  0xea   :  { %v220_v63 = vadd.f32 %v218_v61, %v196_v60  ;;  %v221_v0 = vadd.f32 %v219_v62, %v197_v59 }
  0xec   :  { %v1495_v2 = vmul.f32 -1.442695, %v220_v63  ;;  %v1496_v3 = vmul.f32 -1.442695, %v221_v0 }
  0xee   :  { %1667 = vpow2.f32 %v1495_v2  ;;  %v2038_v2 = vld [vmem:[%s2649_s6] sm:$0xff] }
  0xef   :  { %1669 = vpow2.f32 %v1496_v3 }
  0xf8   :  { %v1668_v4 = vpop.eup %1667 }
  0xf9   :  { %v1670_v5 = vpop.eup %1669  ;;  %v228_v6 = vadd.f32 1.0, %v1668_v4  ;;  %v2046_v4 = vld [vmem:[%s2649_s6 + $0x8] sm:$0xff] }
  0xfa   :  { %v229_v7 = vadd.f32 1.0, %v1670_v5 }
  0xfb   :  { %1671 = vrcp.f32 %v228_v6 }
  0xfc   :  { %1673 = vrcp.f32 %v229_v7 }
 0x105   :  { %v1672_v8 = vpop.eup %1671 }
 0x106   :  { %v1674_v12 = vpop.eup %1673  ;;  %v1929_v13 = vmul.f32 %v1672_v8, %v220_v63 }
 0x107   :  { %v1931_v16 = vmul.f32 %v1674_v12, %v221_v0 }
 0x109   :  { %2658 = vst [vmem:[#allocation5_spill] sm:$0xff] %v1931_v16  ;;  %v236_v18 = vpack.c.bf16 %v1931_v16, %v1929_v13 }
 0x10b   :  { %1635 = vmatmul.mubr.msk.bf16.vlgmr.msra.gmra.mrb[0].mxu1 %vm269_vm12, %v236_v18 }
 0x1de   :  { %v307_v20 = vpop.f32.mrb[0].mxu1 }
 0x1df   :  { %v321_v21 = vadd.f32 %v1502_v19, %v307_v20  ;;  %v1636_v22 = vpop.f32.mrb[1].mxu1  ;;  %v352_v23 = vrot.slane %v307_v20, %v1890_v14  ;;  %v340_v24 = vrot.slane %v307_v20, %v1883_v11  ;;  %v364_v34 = vrot.slane %v307_v20, %v1893_v15 }
 0x1e0   :  { %v1941_v26 = vpop.f32.mrb[2].mxu1  ;;  %v376_v39 = vrot.slane %v307_v20, %v1880_v10  ;;  %v388_v40 = vrot.slane %v307_v20, %v1947_v30  ;;  %v1979_v43 = vrot.slane %v307_v20, %v1950_v31  ;;  %v1983_v45 = vrot.slane %v307_v20, %v1953_v32 }
 0x1e1   :  { %v325_v27 = vmul.f32 1.442695, %v321_v21  ;;  %v1944_v28 = vadd.f32 %v1502_v19, %v1941_v26  ;;  %359 = vbcast.lane.b32.xlu1 %v352_v23, 328  ;;  %343 = vbcast.lane.b32.xlu0 %v340_v24, 320  ;;  %v1637_v29 = vpop.f32.mrb[3].mxu1  ;;  %v1961_v35 = vrot.slane %v1941_v26, %v1947_v30  ;;  %v1966_v37 = vrot.slane %v1941_v26, %v1950_v31 }
 0x1e2   :  { %v1970_v38 = vrot.slane %v1941_v26, %v1953_v32  ;;  %v1974_v9 = vrot.slane %v1941_v26, %v1956_v33  ;;  %vm323_vm13 = vcmp.gt.f32.partialorder %v321_v21, 20.0  ;;  %v424_v54 = vrot.slane %v307_v20, %v1956_v33 }
 0x1e3   :  { %1675 = vpow2.f32 %v325_v27  ;;  %v327_v36 = vmul.f32 1.442695, %v1944_v28  ;;  %vm324_vm14 = vcmp.gt.f32.partialorder %v1944_v28, 20.0 }
 0x1e5   :  { %371 = vbcast.lane.b32.xlu1 %v364_v34, 328  ;;  %347 = vbcast.lane.b32.xlu0 %v340_v24, 328  ;;  %1677 = vpow2.f32 %v327_v36  ;;  %v436_v36 = vrot.slane %v1941_v26, %v1883_v11 }
 0x1e9   :  { %383 = vbcast.lane.b32.xlu1 %v376_v39, 328  ;;  %355 = vbcast.lane.b32.xlu0 %v352_v23, 320 }
 0x1ed   :  { %v1676_v41 = vpop.eup %1675  ;;  %395 = vbcast.lane.b32.xlu1 %v388_v40, 328  ;;  %367 = vbcast.lane.b32.xlu0 %v364_v34, 320 }
 0x1ee   :  { %v329_v42 = vadd.f32 1.0, %v1676_v41 }
 0x1ef   :  { %v1678_v44 = vpop.eup %1677 }
 0x1f0   :  { %1679 = vlog2.f32 %v329_v42  ;;  %v330_v46 = vadd.f32 1.0, %v1678_v44  ;;  %v460_v44 = vrot.slane %v1941_v26, %v1893_v15 }
 0x1f1   :  { %407 = vbcast.lane.b32.xlu1 %v1979_v43, 328  ;;  %379 = vbcast.lane.b32.xlu0 %v376_v39, 320 }
 0x1f2   :  { %1681 = vlog2.f32 %v330_v46 }
 0x1f5   :  { %419 = vbcast.lane.b32.xlu1 %v1983_v45, 328  ;;  %391 = vbcast.lane.b32.xlu0 %v388_v40, 320 }
 0x1f9   :  { %535 = vbcast.lane.b32.xlu1 %v340_v24, 344  ;;  %403 = vbcast.lane.b32.xlu0 %v1979_v43, 320 }
 0x1fa   :  { %v1680_v47 = vpop.eup %1679 }
 0x1fb   :  { %v332_v48 = vmul.f32 0.6931472, %v1680_v47 }
 0x1fc   :  { %v1682_v53 = vpop.eup %1681 }
 0x1fd   :  { %v1987_v49 = vsel %vm323_vm13, %v321_v21, %v332_v48  ;;  %543 = vbcast.lane.b32.xlu1 %v352_v23, 344  ;;  %415 = vbcast.lane.b32.xlu0 %v1983_v45, 320  ;;  %v334_v56 = vmul.f32 0.6931472, %v1682_v53 }
 0x1fe   :  { %v1992_v50 = vrot.slane %v1987_v49, %v1947_v30  ;;  %v1996_v51 = vrot.slane %v1987_v49, %v1950_v31  ;;  %v2000_v52 = vmul.f32 %v1987_v49, %v1929_v13  ;;  %v2013_v58 = vrot.slane %v1987_v49, %v1953_v32 }
 0x1ff   :  { %v2025_v61 = vsel %vm324_vm14, %v1944_v28, %v334_v56  ;;  %v2029_v62 = vrot.slane %v1987_v49, %v1956_v33  ;;  %v664_v46 = vrot.slane %v1987_v49, %v1883_v11 }
 0x200   :  { %v2005_v55 = vrot.slane %v2000_v52, %v1947_v30  ;;  %v2009_v57 = vrot.slane %v2000_v52, %v1950_v31  ;;  %v2017_v59 = vrot.slane %v2000_v52, %v1953_v32  ;;  %v2022_v60 = vrot.slane %v2000_v52, %v1956_v33 }
 0x201   :  { %551 = vbcast.lane.b32.xlu1 %v364_v34, 344  ;;  %531 = vbcast.lane.b32.xlu0 %v340_v24, 336  ;;  %v1042_v63 = vrot.slane %v2025_v61, %v1890_v14  ;;  %v1084_v0 = vrot.slane %v2025_v61, %v1893_v15  ;;  %v1126_v3 = vrot.slane %v2025_v61, %v1880_v10 }
 0x202   :  { %v2053_v6 = vmul.f32 %v2025_v61, %v1931_v16  ;;  %v1168_v20 = vrot.slane %v2025_v61, %v1947_v30  ;;  %v1210_v22 = vrot.slane %v2025_v61, %v1950_v31  ;;  %v1252_v28 = vrot.slane %v2025_v61, %v1953_v32 }
 0x203   :  { %v2049_v5 = vmul.f32 %v1042_v63, %v2038_v2  ;;  %v2056_v7 = vmul.f32 %v1042_v63, %v2046_v4  ;;  %v2059_v8 = vmul.f32 %v1084_v0, %v2038_v2  ;;  %v2062_v12 = vmul.f32 %v1084_v0, %v2046_v4 }
 0x204   :  { %v2065_v18 = vmul.f32 %v1126_v3, %v2038_v2  ;;  %v2069_v19 = vmul.f32 %v1126_v3, %v2046_v4  ;;  %v2075_v21 = vrot.slane %v2053_v6, %v1947_v30  ;;  %v2084_v24 = vmul.f32 %v1168_v20, %v2038_v2 }
 0x205   :  { %431 = vbcast.lane.b32.xlu1 %v424_v54, 328  ;;  %539 = vbcast.lane.b32.xlu0 %v352_v23, 336  ;;  %v2081_v23 = vrot.slane %v2053_v6, %v1950_v31  ;;  %v2087_v27 = vmul.f32 %v1168_v20, %v2046_v4  ;;  %v2093_v29 = vmul.f32 %v1210_v22, %v2038_v2 }
 0x206   :  { %v2096_v30 = vmul.f32 %v1210_v22, %v2046_v4  ;;  %v2100_v31 = vrot.slane %v2053_v6, %v1953_v32  ;;  %v1294_v41 = vrot.slane %v2025_v61, %v1956_v33  ;;  %v665_v47 = vmul.f32 %v664_v46, %v2038_v2 }
 0x207   :  { %v666_v53 = vmul.f32 %v664_v46, %v2046_v4  ;;  %v748_v3 = vrot.slane %v1987_v49, %v1893_v15 }
 0x208   :  { %v2118_v32 = vmul.f32 %v1294_v41, %v2038_v2  ;;  %v2121_v42 = vmul.f32 %v1294_v41, %v2046_v4  ;;  %v667_v48 = vmul.f32 1.442695, %v665_v47 }
 0x209   :  { %559 = vbcast.lane.b32.xlu1 %v376_v39, 344  ;;  %547 = vbcast.lane.b32.xlu0 %v364_v34, 336  ;;  %v2103_v34 = vmul.f32 %v1252_v28, %v2038_v2  ;;  %v669_v56 = vmul.f32 1.442695, %v666_v53  ;;  %v750_v41 = vmul.f32 %v748_v3, %v2046_v4  ;;  %v749_v46 = vmul.f32 %v748_v3, %v2038_v2 }
 0x20b   :  { %v753_v47 = vmul.f32 1.442695, %v750_v41 }
 0x20d   :  { %567 = vbcast.lane.b32.xlu1 %v388_v40, 344  ;;  %427 = vbcast.lane.b32.xlu0 %v424_v54, 320 }
 0x211   :  { %575 = vbcast.lane.b32.xlu1 %v1979_v43, 344  ;;  %555 = vbcast.lane.b32.xlu0 %v376_v39, 336  ;;  %v2108_v39 = vmul.f32 %v1252_v28, %v2046_v4 }
 0x215   :  { %583 = vbcast.lane.b32.xlu1 %v1983_v45, 344  ;;  %563 = vbcast.lane.b32.xlu0 %v388_v40, 336  ;;  %v2112_v40 = vrot.slane %v2053_v6, %v1956_v33  ;;  %v472_v33 = vrot.slane %v1941_v26, %v1880_v10 }
 0x219   :  { %591 = vbcast.lane.b32.xlu1 %v424_v54, 344  ;;  %571 = vbcast.lane.b32.xlu0 %v1979_v43, 336  ;;  %v448_v43 = vrot.slane %v1941_v26, %v1890_v14  ;;  %v1567_v26 = vmul.f32 -1.442695, %v1907_v25 }
 0x21d   :  { %579 = vbcast.lane.b32.xlu0 %v1983_v45, 336  ;;  %439 = vbcast.lane.b32.xlu1 %v436_v36, 320  ;;  %v1566_v45 = vmul.f32 -1.442695, %v1896_v17 }
 0x21f   :  { %1683 = vpow2.f32 %v1566_v45 }
 0x220   :  { %1685 = vpow2.f32 %v1567_v26 }
 0x221   :  { %587 = vbcast.lane.b32.xlu0 %v424_v54, 336  ;;  %443 = vbcast.lane.b32.xlu1 %v436_v36, 328  ;;  %v706_v54 = vrot.slane %v1987_v49, %v1890_v14  ;;  %1687 = vpow2.f32 %v667_v48 }
 0x222   :  { %1689 = vpow2.f32 %v669_v56 }
 0x223   :  { %v708_v0 = vmul.f32 %v706_v54, %v2046_v4  ;;  %v707_v20 = vmul.f32 %v706_v54, %v2038_v2 }
 0x225   :  { %451 = vbcast.lane.b32.xlu0 %v448_v43, 320  ;;  %455 = vbcast.lane.b32.xlu1 %v448_v43, 328 }
 0x229   :  { %463 = vbcast.lane.b32.xlu0 %v460_v44, 320  ;;  %467 = vbcast.lane.b32.xlu1 %v460_v44, 328  ;;  %v1684_v63 = vpop.eup %1683 }
 0x22a   :  { %v1686_v22 = vpop.eup %1685  ;;  %v1368_v28 = vadd.f32 1.0, %v1684_v63 }
 0x22b   :  { %v1369_v45 = vadd.f32 1.0, %v1686_v22  ;;  %v1688_v26 = vpop.eup %1687 }
 0x22c   :  { %1691 = vrcp.f32 %v1368_v28  ;;  %v1690_v3 = vpop.eup %1689 }
 0x22d   :  { %475 = vbcast.lane.b32.xlu0 %v472_v33, 320  ;;  %479 = vbcast.lane.b32.xlu1 %v472_v33, 328 }
 0x231   :  { %487 = vbcast.lane.b32.xlu0 %v1961_v35, 320  ;;  %491 = vbcast.lane.b32.xlu1 %v1961_v35, 328 }
 0x235   :  { %499 = vbcast.lane.b32.xlu0 %v1966_v37, 320  ;;  %503 = vbcast.lane.b32.xlu1 %v1966_v37, 328 }
 0x239   :  { %511 = vbcast.lane.b32.xlu0 %v1970_v38, 320  ;;  %515 = vbcast.lane.b32.xlu1 %v1970_v38, 328 }
 0x23d   :  { %595 = vbcast.lane.b32.xlu0 %v436_v36, 336  ;;  %599 = vbcast.lane.b32.xlu1 %v436_v36, 344  ;;  %v711_v36 = vmul.f32 1.442695, %v708_v0  ;;  %v677_v0 = vmul.f32 0.0, %v1688_v26  ;;  %v716_v26 = vrot.slane %v2000_v52, %v1890_v14 }
 0x23f   :  { %1693 = vpow2.f32 %v711_v36  ;;  %v833_v36 = vmul.f32 %v1992_v50, %v2038_v2 }
 0x241   :  { %603 = vbcast.lane.b32.xlu0 %v448_v43, 336  ;;  %607 = vbcast.lane.b32.xlu1 %v448_v43, 344  ;;  %v790_v43 = vrot.slane %v1987_v49, %v1880_v10  ;;  %v751_v49 = vmul.f32 1.442695, %v749_v46  ;;  %v1692_v46 = vpop.eup %1691 }
 0x243   :  { %v792_v48 = vmul.f32 %v790_v43, %v2046_v4  ;;  %v791_v53 = vmul.f32 %v790_v43, %v2038_v2 }
 0x245   :  { %611 = vbcast.lane.b32.xlu0 %v460_v44, 336  ;;  %615 = vbcast.lane.b32.xlu1 %v460_v44, 344  ;;  %v709_v44 = vmul.f32 1.442695, %v707_v20  ;;  %v834_v20 = vmul.f32 %v1992_v50, %v2046_v4  ;;  %v793_v28 = vmul.f32 1.442695, %v791_v53  ;;  %v876_v50 = vmul.f32 %v1996_v51, %v2046_v4 }
 0x246   :  { %v875_v53 = vmul.f32 %v1996_v51, %v2038_v2 }
 0x247   :  { %1695 = vpow2.f32 %v709_v44  ;;  %v879_v51 = vmul.f32 1.442695, %v876_v50 }
 0x248   :  { %1697 = vrcp.f32 %v1369_v45 }
 0x249   :  { %523 = vbcast.lane.b32.xlu0 %v1974_v9, 320  ;;  %527 = vbcast.lane.b32.xlu1 %v1974_v9, 328  ;;  %1699 = vpow2.f32 %v753_v47  ;;  %v837_v47 = vmul.f32 1.442695, %v834_v20 }
 0x24a   :  { %1701 = vpow2.f32 %v751_v49  ;;  %v835_v49 = vmul.f32 1.442695, %v833_v36  ;;  %v758_v36 = vrot.slane %v2000_v52, %v1893_v15 }
 0x24d   :  { %619 = vbcast.lane.b32.xlu0 %v472_v33, 336  ;;  %623 = vbcast.lane.b32.xlu1 %v472_v33, 344  ;;  %v674_v33 = vrot.slane %v2000_v52, %v1883_v11 }
 0x251   :  { %627 = vbcast.lane.b32.xlu0 %v1961_v35, 336  ;;  %631 = vbcast.lane.b32.xlu1 %v1961_v35, 344  ;;  %v795_v35 = vmul.f32 1.442695, %v792_v48  ;;  %v1694_v48 = vpop.eup %1693 }
 0x253   :  { %v360_v54 = vpop.permute.xlu1 %359  ;;  %v344_v56 = vpop.permute.xlu0 %343  ;;  %1703 = vpow2.f32 %v795_v35 }
 0x254   :  { %v675_v63 = vmul.f32 %v674_v33, %v344_v56  ;;  %1705 = vpow2.f32 %v793_v28  ;;  %v1696_v56 = vpop.eup %1695 }
 0x255   :  { %635 = vbcast.lane.b32.xlu0 %v1966_v37, 336  ;;  %639 = vbcast.lane.b32.xlu1 %v1966_v37, 344  ;;  %v678_v37 = vmul.f32 0.0, %v1690_v3  ;;  %v918_v3 = vmul.f32 %v2013_v58, %v2046_v4  ;;  %v1698_v35 = vpop.eup %1697  ;;  %1707 = vpow2.f32 %v837_v47 }
 0x256   :  { %v2163_v22 = vadd.f32 %v677_v0, %v675_v63  ;;  %1709 = vpow2.f32 %v835_v49 }
 0x257   :  { %v372_v41 = vpop.permute.xlu1 %371  ;;  %v348_v43 = vpop.permute.xlu0 %347  ;;  %1711 = vpow2.f32 %v879_v51 }
 0x258   :  { %v1573_v44 = vpack.c.bf16 %v2163_v22, %v2163_v22  ;;  %v676_v45 = vmul.f32 %v674_v33, %v348_v43  ;;  %v719_v28 = vmul.f32 %v1696_v56, %v2163_v22  ;;  %v1374_v56 = vmul.f32 %v1692_v46, %v1896_v17 }
 0x259   :  { %643 = vbcast.lane.b32.xlu0 %v1970_v38, 336  ;;  %647 = vbcast.lane.b32.xlu1 %v1970_v38, 344  ;;  %v718_v38 = vmul.f32 %v716_v26, %v360_v54  ;;  %v917_v54 = vmul.f32 %v2013_v58, %v2038_v2  ;;  %v1375_v58 = vmul.f32 %v1698_v35, %v1907_v25 }
 0x25a   :  { %690 = vst.msk [vmem:[%s2653_s10] sm:$0xf] %vm689_vm15, %v1573_v44  ;;  %v2179_v33 = vadd.f32 %v678_v37, %v676_v45  ;;  %v760_v16 = vmul.f32 %v758_v36, %v372_v41  ;;  %v960_v17 = vmul.f32 %v2029_v62, %v2046_v4  ;;  %v959_v41 = vmul.f32 %v2029_v62, %v2038_v2 }
 0x25b   :  { %v384_v63 = vpop.permute.xlu1 %383  ;;  %v356_v0 = vpop.permute.xlu0 %355 }
 0x25c   :  { %v1574_v20 = vpack.c.bf16 %v2179_v33, %v2179_v33  ;;  %v720_v43 = vmul.f32 %v1694_v48, %v2179_v33  ;;  %v717_v44 = vmul.f32 %v716_v26, %v356_v0  ;;  %v877_v26 = vmul.f32 1.442695, %v875_v53  ;;  %v1700_v48 = vpop.eup %1699 }
 0x25d   :  { %651 = vbcast.lane.b32.xlu0 %v1974_v9, 336  ;;  %655 = vbcast.lane.b32.xlu1 %v1974_v9, 344  ;;  %v800_v9 = vrot.slane %v2000_v52, %v1880_v10  ;;  %v921_v0 = vmul.f32 1.442695, %v918_v3  ;;  %v1702_v1 = vpop.eup %1701  ;;  %v963_v62 = vmul.f32 1.442695, %v960_v17 }
 0x25e   :  { %691 = vst.msk [vmem:[%s2653_s10 + $0x4] sm:$0xf] %vm689_vm15, %v1574_v20  ;;  %v2199_v45 = vadd.f32 %v720_v43, %v718_v38  ;;  %v2201_v37 = vadd.f32 %v719_v28, %v717_v44  ;;  %1713 = vpow2.f32 %v877_v26  ;;  %v1704_v46 = vpop.eup %1703  ;;  %v1664_v17 = vld [vmem:[%s2651_s8 + $0x8] sm:$0xff]  }
 0x25f   :  { %v396_v47 = vpop.permute.xlu1 %395  ;;  %v368_v50 = vpop.permute.xlu0 %367  ;;  %v802_v28 = vmul.f32 %v800_v9, %v384_v63  ;;  %1715 = vpow2.f32 %v921_v0  ;;  %v1663_v63 = vld [vmem:[%s2651_s8] sm:$0xff]  }
 0x260   :  { %v1576_v38 = vpack.c.bf16 %v2199_v45, %v2199_v45  ;;  %v762_v20 = vmul.f32 %v1700_v48, %v2199_v45  ;;  %v1575_v49 = vpack.c.bf16 %v2201_v37, %v2201_v37  ;;  %v759_v53 = vmul.f32 %v758_v36, %v368_v50  ;;  %v1706_v44 = vpop.eup %1705  ;;  %1639 = vmatpush3.bf16.msra.mxu0 %v1663_v63 }
 0x261   :  { %v761_v52 = vmul.f32 %v1702_v1, %v2201_v37  ;;  %1378 = vrot.lane.b32.xlu0 %v1374_v56, %s1781_s22  ;;  %1380 = vrot.lane.b32.xlu1 %v1375_v58, %s1781_s22  ;;  %v919_v1 = vmul.f32 1.442695, %v917_v54  ;;  %v961_v50 = vmul.f32 1.442695, %v959_v41 }
 0x262   :  { %1508 = vst.msk [vmem:[%s2653_s10 + $0xc] sm:$0xf] %vm689_vm15, %v1576_v38  ;;  %v2219_v25 = vadd.f32 %v762_v20, %v760_v16  ;;  %1507 = vst.msk [vmem:[%s2653_s10 + $0x8] sm:$0xf] %vm689_vm15, %v1575_v49  ;;  %v844_v49 = vmul.f32 %v2005_v55, %v396_v47 }
 0x263   :  { %v2227_v3 = vadd.f32 %v761_v52, %v759_v53  ;;  %v408_v35 = vpop.permute.xlu1 %407  ;;  %v380_v43 = vpop.permute.xlu0 %379  ;;  %1717 = vpow2.f32 %v919_v1 }
 0x264   :  { %v1578_v16 = vpack.c.bf16 %v2219_v25, %v2219_v25  ;;  %v804_v36 = vmul.f32 %v1704_v46, %v2219_v25  ;;  %v801_v51 = vmul.f32 %v800_v9, %v380_v43  ;;  %v1708_v9 = vpop.eup %1707  ;;  %1719 = vpow2.f32 %v963_v62 }
 0x265   :  { %v1577_v26 = vpack.c.bf16 %v2227_v3, %v2227_v3  ;;  %v803_v54 = vmul.f32 %v1706_v44, %v2227_v3  ;;  %v1710_v38 = vpop.eup %1709  ;;  %v2659_v46 = vmov 0.0   ;;  %1721 = vpow2.f32 %v961_v50 }
 0x266   :  { %1512 = vst.msk [vmem:[%s2653_s10 + $0x14] sm:$0xf] %vm689_vm15, %v1578_v16  ;;  %v2239_v48 = vadd.f32 %v804_v36, %v802_v28  ;;  %1640 = vmatprep.subr.bf16.mxu0 %v2659_v46  ;;  %v886_v43 = vmul.f32 %v2009_v57, %v408_v35  ;;  %v1665_v35 = vld [vmem:[%s2651_s8 + $0x10] sm:$0xff]  }
 0x267   :  { %1511 = vst.msk [vmem:[%s2653_s10 + $0x10] sm:$0xf] %vm689_vm15, %v1577_v26  ;;  %v2248_v56 = vadd.f32 %v803_v54, %v801_v51  ;;  %v420_v58 = vpop.permute.xlu1 %419  ;;  %v392_v0 = vpop.permute.xlu0 %391  ;;  %1641 = vmatpush3.bf16.msra.mxu0 %v1664_v17 }
 0x268   :  { %v1580_v20 = vpack.c.bf16 %v2239_v48, %v2239_v48  ;;  %v846_v53 = vmul.f32 %v1708_v9, %v2239_v48  ;;  %v843_v52 = vmul.f32 %v2005_v55, %v392_v0  ;;  %v1712_v55 = vpop.eup %1711  ;;  %1642 = vmatprep.subr.bf16.mxu0 %v2659_v46  ;;  %v928_v9 = vmul.f32 %v2017_v59, %v420_v58  ;;  %v1666_v58 = vld [vmem:[%s2651_s8 + $0x18] sm:$0xff]  }
 0x269   :  { %v1579_v1 = vpack.c.bf16 %v2248_v56, %v2248_v56  ;;  %v845_v41 = vmul.f32 %v1710_v38, %v2248_v56  ;;  %v1714_v36 = vpop.eup %1713 }
 0x26a   :  { %1516 = vst.msk [vmem:[%s2653_s10 + $0x1c] sm:$0xf] %vm689_vm15, %v1580_v20  ;;  %v2266_v47 = vadd.f32 %v846_v53, %v844_v49 }
 0x26b   :  { %1515 = vst.msk [vmem:[%s2653_s10 + $0x18] sm:$0xf] %vm689_vm15, %v1579_v1  ;;  %v2273_v44 = vadd.f32 %v845_v41, %v843_v52  ;;  %v536_v16 = vpop.permute.xlu1 %535  ;;  %v404_v28 = vpop.permute.xlu0 %403  ;;  %1643 = vmatpush3.bf16.msra.mxu0 %v1665_v35 }
 0x26c   :  { %v1582_v51 = vpack.c.bf16 %v2266_v47, %v2266_v47  ;;  %v888_v26 = vmul.f32 %v1712_v55, %v2266_v47  ;;  %v693_v54 = vmul.f32 %v2179_v33, %v536_v16  ;;  %v885_v62 = vmul.f32 %v2009_v57, %v404_v28  ;;  %v1716_v57 = vpop.eup %1715  ;;  %1644 = vmatprep.subr.bf16.mxu0 %v2659_v46 }
 0x26d   :  { %v1581_v50 = vpack.c.bf16 %v2273_v44, %v2273_v44  ;;  %v887_v63 = vmul.f32 %v1714_v36, %v2273_v44  ;;  %v1718_v49 = vpop.eup %1717 }
 0x26e   :  { %1520 = vst.msk [vmem:[%s2653_s10 + $0x24] sm:$0xf] %vm689_vm15, %v1582_v51  ;;  %v2291_v33 = vadd.f32 %v888_v26, %v886_v43 }
 0x26f   :  { %1519 = vst.msk [vmem:[%s2653_s10 + $0x20] sm:$0xf] %vm689_vm15, %v1581_v50  ;;  %v2298_v0 = vadd.f32 %v887_v63, %v885_v62  ;;  %v544_v38 = vpop.permute.xlu1 %543  ;;  %v416_v20 = vpop.permute.xlu0 %415  ;;  %1645 = vmatpush3.bf16.msra.mxu0 %v1666_v58  ;;  %v695_v63 = vsel %vm269_vm12, %v693_v54, 0.0 }
 0x270   :  { %v1584_v53 = vpack.c.bf16 %v2291_v33, %v2291_v33  ;;  %v930_v52 = vmul.f32 %v1716_v57, %v2291_v33  ;;  %v735_v17 = vmul.f32 %v2199_v45, %v544_v38  ;;  %v927_v1 = vmul.f32 %v2017_v59, %v416_v20  ;;  %v1720_v59 = vpop.eup %1719 }
 0x271   :  { %v1583_v41 = vpack.c.bf16 %v2298_v0, %v2298_v0  ;;  %v929_v55 = vmul.f32 %v1718_v49, %v2298_v0  ;;  %v1722_v36 = vpop.eup %1721 }
 0x272   :  { %1524 = vst.msk [vmem:[%s2653_s10 + $0x2c] sm:$0xf] %vm689_vm15, %v1584_v53  ;;  %v2316_v45 = vadd.f32 %v930_v52, %v928_v9  ;;  %v737_v54 = vsel %vm269_vm12, %v735_v17, 0.0 }
 0x273   :  { %1523 = vst.msk [vmem:[%s2653_s10 + $0x28] sm:$0xf] %vm689_vm15, %v1583_v41  ;;  %v2322_v43 = vadd.f32 %v929_v55, %v927_v1  ;;  %v552_v16 = vpop.permute.xlu1 %551  ;;  %v532_v28 = vpop.permute.xlu0 %531 }
 0x274   :  { %v1586_v46 = vpack.c.bf16 %v2316_v45, %v2316_v45  ;;  %v777_v51 = vmul.f32 %v2219_v25, %v552_v16  ;;  %v692_v26 = vmul.f32 %v2163_v22, %v532_v28  ;;  %v972_v62 = vmul.f32 %v1720_v59, %v2316_v45 }
 0x275   :  { %v1585_v35 = vpack.c.bf16 %v2322_v43, %v2322_v43  ;;  %v971_v50 = vmul.f32 %v1722_v36, %v2322_v43  ;;  %v1000_v22 = vrot.slane %v2025_v61, %v1883_v11 }
 0x276   :  { %1528 = vst.msk [vmem:[%s2653_s10 + $0x34] sm:$0xf] %vm689_vm15, %v1586_v46  ;;  %v694_v57 = vsel %vm269_vm12, %v692_v26, 0.0  ;;  %v779_v26 = vsel %vm269_vm12, %v777_v51, 0.0  ;;  %v2366_v51 = vrot.slane %v2053_v6, %v1883_v11 }
 0x277   :  { %1527 = vst.msk [vmem:[%s2653_s10 + $0x30] sm:$0xf] %vm689_vm15, %v1585_v35  ;;  %v696_v25 = vadd.f32 %v695_v63, %v694_v57  ;;  %v432_v9 = vpop.permute.xlu1 %431  ;;  %v540_v38 = vpop.permute.xlu0 %539  ;;  %v1001_v61 = vmul.f32 %v1000_v22, %v2038_v2  ;;  %v1002_v17 = vmul.f32 %v1000_v22, %v2046_v4 }
 0x278   :  { %v970_v20 = vmul.f32 %v2022_v60, %v432_v9  ;;  %v734_v49 = vmul.f32 %v2201_v37, %v540_v38 }
 0x279   :  { %v697_v53 = vrot.slane %v696_v25, 4  ;;  %v1003_v2 = vmul.f32 1.442695, %v1001_v61  ;;  %v1005_v38 = vmul.f32 1.442695, %v1002_v17 }
 0x27a   :  { %v736_v52 = vsel %vm269_vm12, %v734_v49, 0.0  ;;  %v2348_v1 = vadd.f32 %v972_v62, %v970_v20  ;;  %v2370_v20 = vrot.slane %v2053_v6, %v1890_v14 }
 0x27b   :  { %v698_v58 = vadd.f32 %v697_v53, %v696_v25  ;;  %v738_v41 = vadd.f32 %v737_v54, %v736_v52  ;;  %v560_v55 = vpop.permute.xlu1 %559  ;;  %v548_v59 = vpop.permute.xlu0 %547  ;;  %1723 = vpow2.f32 %v1003_v2  ;;  %v1045_v53 = vmul.f32 1.442695, %v2049_v5 }
 0x27c   :  { %v819_v16 = vmul.f32 %v2239_v48, %v560_v55  ;;  %v776_v28 = vmul.f32 %v2227_v3, %v548_v59  ;;  %v1588_v37 = vpack.c.bf16 %v2348_v1, %v2348_v1  ;;  %v1087_v5 = vmul.f32 1.442695, %v2059_v8 }
 0x27d   :  { %v699_v36 = vrot.slane %v698_v58, 2  ;;  %v739_v46 = vrot.slane %v738_v41, 4  ;;  %1725 = vpow2.f32 %v1005_v38 }
 0x27e   :  { %v778_v62 = vsel %vm269_vm12, %v776_v28, 0.0  ;;  %1532 = vst.msk [vmem:[%s2653_s10 + $0x3c] sm:$0xf] %vm689_vm15, %v1588_v37  ;;  %v821_v28 = vsel %vm269_vm12, %v819_v16, 0.0  ;;  %1727 = vpow2.f32 %v1045_v53 }
 0x27f   :  { %v700_v48 = vadd.f32 %v699_v36, %v698_v58  ;;  %v740_v35 = vadd.f32 %v739_v46, %v738_v41  ;;  %v780_v3 = vadd.f32 %v779_v26, %v778_v62  ;;  %v568_v63 = vpop.permute.xlu1 %567  ;;  %v428_v57 = vpop.permute.xlu0 %427  ;;  %v1047_v58 = vmul.f32 1.442695, %v2056_v7 }
 0x280   :  { %v861_v25 = vmul.f32 %v2266_v47, %v568_v63  ;;  %v969_v4 = vmul.f32 %v2022_v60, %v428_v57  ;;  %v2377_v60 = vrot.slane %v2053_v6, %v1893_v15  ;;  %v1089_v15 = vmul.f32 1.442695, %v2062_v12 }
 0x281   :  { %v741_v22 = vrot.slane %v740_v35, 2  ;;  %v781_v9 = vrot.slane %v780_v3, 4  ;;  %v701_v47 = vrot.slane %v700_v48, 1  ;;  %v2394_v7 = vrot.slane %v2053_v6, %v1880_v10 }
 0x282   :  { %v2372_v49 = vadd.f32 %v971_v50, %v969_v4  ;;  %1729 = vpow2.f32 %v1047_v58  ;;  %v1129_v26 = vmul.f32 1.442695, %v2065_v18  ;;  %v863_v10 = vsel %vm269_vm12, %v861_v25, 0.0 }
 0x283   :  { %v742_v11 = vadd.f32 %v741_v22, %v740_v35  ;;  %v782_v54 = vadd.f32 %v781_v9, %v780_v3  ;;  %v576_v52 = vpop.permute.xlu1 %575  ;;  %v556_v61 = vpop.permute.xlu0 %555  ;;  %v702_v8 = vadd.f32 %v701_v47, %v700_v48  ;;  %1731 = vpow2.f32 %v1087_v5 }
 0x284   :  { %v903_v14 = vmul.f32 %v2291_v33, %v576_v52  ;;  %v818_v41 = vmul.f32 %v2248_v56, %v556_v61  ;;  %v1587_v50 = vpack.c.bf16 %v2372_v49, %v2372_v49  ;;  %1733 = vpow2.f32 %v1089_v15 }
 0x285   :  { %v743_v55 = vrot.slane %v742_v11, 1  ;;  %v783_v59 = vrot.slane %v782_v54, 2  ;;  %v1131_v48 = vmul.f32 1.442695, %v2069_v19  ;;  %v1171_v4 = vmul.f32 1.442695, %v2084_v24  ;;  %v1724_v18 = vpop.eup %1723 }
 0x286   :  { %v820_v37 = vsel %vm269_vm12, %v818_v41, 0.0  ;;  %1531 = vst.msk [vmem:[%s2653_s10 + $0x38] sm:$0xf] %vm689_vm15, %v1587_v50  ;;  %1735 = vpow2.f32 %v1129_v26  ;;  %v1173_v25 = vmul.f32 1.442695, %v2087_v27  ;;  %v1013_v5 = vmul.f32 0.0, %v1724_v18 }
 0x287   :  { %v744_v56 = vadd.f32 %v743_v55, %v742_v11  ;;  %v784_v33 = vadd.f32 %v783_v59, %v782_v54  ;;  %v822_v36 = vadd.f32 %v821_v28, %v820_v37  ;;  %v584_v46 = vpop.permute.xlu1 %583  ;;  %v564_v12 = vpop.permute.xlu0 %563  ;;  %v1213_v19 = vmul.f32 1.442695, %v2093_v29 }
 0x288   :  { %v945_v16 = vmul.f32 %v2316_v45, %v584_v46  ;;  %v860_v17 = vmul.f32 %v2273_v44, %v564_v12  ;;  %v905_v11 = vsel %vm269_vm12, %v903_v14, 0.0  ;;  %1737 = vpow2.f32 %v1131_v48 }
 0x289   :  { %v1334_v62 = vsel %vm1333_vm0, %v702_v8, %v744_v56  ;;  %v785_v2 = vrot.slane %v784_v33, 1  ;;  %v823_v35 = vrot.slane %v822_v36, 4  ;;  %v2412_v24 = vmul.f32 1.442695, %v2096_v30 }
 0x28a   :  { %v862_v6 = vsel %vm269_vm12, %v860_v17, 0.0  ;;  %1739 = vpow2.f32 %v1171_v4  ;;  %v947_v15 = vsel %vm269_vm12, %v945_v16, 0.0 }
 0x28b   :  { %v786_v3 = vadd.f32 %v785_v2, %v784_v33  ;;  %v824_v63 = vadd.f32 %v823_v35, %v822_v36  ;;  %v864_v45 = vadd.f32 %v863_v10, %v862_v6  ;;  %v592_v57 = vpop.permute.xlu1 %591  ;;  %v572_v44 = vpop.permute.xlu0 %571  ;;  %1741 = vpow2.f32 %v1173_v25 }
 0x28c   :  { %v987_v22 = vmul.f32 %v2348_v1, %v592_v57  ;;  %v902_v9 = vmul.f32 %v2298_v0, %v572_v44  ;;  %v1726_v1 = vpop.eup %1725  ;;  %1743 = vpow2.f32 %v1213_v19 }
 0x28d   :  { %v1336_v38 = vsel %vm1335_vm2, %v1334_v62, %v786_v3  ;;  %v825_v53 = vrot.slane %v824_v63, 2  ;;  %v865_v47 = vrot.slane %v864_v45, 4  ;;  %v1728_v41 = vpop.eup %1727  ;;  %v1014_v8 = vmul.f32 0.0, %v1726_v1 }
 0x28e   :  { %v904_v54 = vsel %vm269_vm12, %v902_v9, 0.0  ;;  %v1730_v30 = vpop.eup %1729  ;;  %1745 = vpow2.f32 %v2412_v24 }
 0x28f   :  { %v826_v52 = vadd.f32 %v825_v53, %v824_v63  ;;  %v866_v0 = vadd.f32 %v865_v47, %v864_v45  ;;  %v906_v61 = vadd.f32 %v905_v11, %v904_v54  ;;  %v580_v58 = vpop.permute.xlu0 %579  ;;  %v440_v27 = vpop.permute.xlu1 %439  ;;  %v989_v45 = vsel %vm269_vm12, %v987_v22, 0.0 }
 0x290   :  { %v944_v50 = vmul.f32 %v2322_v43, %v580_v58  ;;  %v1011_v29 = vmul.f32 %v2366_v51, %v440_v27  ;;  %v1732_v56 = vpop.eup %1731 }
 0x291   :  { %v827_v14 = vrot.slane %v826_v52, 1  ;;  %v867_v55 = vrot.slane %v866_v0, 2  ;;  %v907_v59 = vrot.slane %v906_v61, 4  ;;  %v1734_v26 = vpop.eup %1733 }
 0x292   :  { %v946_v28 = vsel %vm269_vm12, %v944_v50, 0.0  ;;  %v2418_v37 = vadd.f32 %v1013_v5, %v1011_v29  ;;  %v1736_v63 = vpop.eup %1735 }
 0x293   :  { %v828_v33 = vadd.f32 %v827_v14, %v826_v52  ;;  %v868_v36 = vadd.f32 %v867_v55, %v866_v0  ;;  %v908_v43 = vadd.f32 %v907_v59, %v906_v61  ;;  %v948_v46 = vadd.f32 %v947_v15, %v946_v28  ;;  %v588_v12 = vpop.permute.xlu0 %587  ;;  %v444_v17 = vpop.permute.xlu1 %443 }
 0x294   :  { %v1589_v62 = vpack.c.bf16 %v2418_v37, %v2418_v37  ;;  %v986_v2 = vmul.f32 %v2372_v49, %v588_v12  ;;  %v1012_v16 = vmul.f32 %v2366_v51, %v444_v17  ;;  %v1055_v35 = vmul.f32 %v1728_v41, %v2418_v37 }
 0x295   :  { %v869_v10 = vrot.slane %v868_v36, 1  ;;  %v909_v6 = vrot.slane %v908_v43, 2  ;;  %v949_v48 = vrot.slane %v948_v46, 4  ;;  %v1337_v3 = vsel %vm112_vm3, %v1336_v38, %v828_v33  ;;  %v1738_v38 = vpop.eup %1737 }
 0x296   :  { %1535 = vst.msk [vmem:[%s2653_s10 + $0x40] sm:$0xf] %vm689_vm15, %v1589_v62  ;;  %v988_v57 = vsel %vm269_vm12, %v986_v2, 0.0  ;;  %v2432_v49 = vadd.f32 %v1014_v8, %v1012_v16  ;;  %v1740_v11 = vpop.eup %1739  ;;  %v1297_v62 = vmul.f32 1.442695, %v2118_v32 }
 0x297   :  { %v870_v51 = vadd.f32 %v869_v10, %v868_v36  ;;  %v910_v44 = vadd.f32 %v909_v6, %v908_v43  ;;  %v950_v4 = vadd.f32 %v949_v48, %v948_v46  ;;  %v990_v18 = vadd.f32 %v989_v45, %v988_v57  ;;  %v452_v9 = vpop.permute.xlu0 %451  ;;  %v456_v25 = vpop.permute.xlu1 %455 }
 0x298   :  { %v1590_v22 = vpack.c.bf16 %v2432_v49, %v2432_v49  ;;  %v1053_v53 = vmul.f32 %v2370_v20, %v452_v9  ;;  %v1054_v47 = vmul.f32 %v2370_v20, %v456_v25  ;;  %v1056_v19 = vmul.f32 %v1730_v30, %v2432_v49  ;;  %v1742_v61 = vpop.eup %1741 }
 0x299   :  { %v911_v54 = vrot.slane %v910_v44, 1  ;;  %v951_v1 = vrot.slane %v950_v4, 2  ;;  %v991_v52 = vrot.slane %v990_v18, 4  ;;  %v1339_v0 = vsel %vm1338_vm4, %v1337_v3, %v870_v51  ;;  %v2450_v41 = vpop.eup %1743 }
 0x29a   :  { %1536 = vst.msk [vmem:[%s2653_s10 + $0x44] sm:$0xf] %vm689_vm15, %v1590_v22  ;;  %v2444_v58 = vadd.f32 %v1055_v35, %v1053_v53  ;;  %v2446_v27 = vadd.f32 %v1056_v19, %v1054_v47  ;;  %v1255_v20 = vmul.f32 1.442695, %v2103_v34 }
 0x29b   :  { %v912_v50 = vadd.f32 %v911_v54, %v910_v44  ;;  %v952_v29 = vadd.f32 %v951_v1, %v950_v4  ;;  %v992_v5 = vadd.f32 %v991_v52, %v990_v18  ;;  %v464_v14 = vpop.permute.xlu0 %463  ;;  %v468_v55 = vpop.permute.xlu1 %467 }
 0x29c   :  { %v1591_v59 = vpack.c.bf16 %v2444_v58, %v2444_v58  ;;  %v1592_v30 = vpack.c.bf16 %v2446_v27, %v2446_v27  ;;  %v1095_v15 = vmul.f32 %v2377_v60, %v464_v14  ;;  %v1097_v24 = vmul.f32 %v1732_v56, %v2444_v58  ;;  %v1746_v44 = vpop.eup %1745 }
 0x29d   :  { %v953_v28 = vrot.slane %v952_v29, 1  ;;  %v993_v34 = vrot.slane %v992_v5, 2  ;;  %v1096_v8 = vmul.f32 %v2377_v60, %v468_v55  ;;  %v1098_v33 = vmul.f32 %v1734_v26, %v2446_v27 }
 0x29e   :  { %1539 = vst.msk [vmem:[%s2653_s10 + $0x48] sm:$0xf] %vm689_vm15, %v1591_v59  ;;  %1540 = vst.msk [vmem:[%s2653_s10 + $0x4c] sm:$0xf] %vm689_vm15, %v1592_v30  ;;  %v2468_v36 = vadd.f32 %v1097_v24, %v1095_v15  ;;  %1747 = vpow2.f32 %v1255_v20  ;;  %v1257_v56 = vmul.f32 1.442695, %v2108_v39  ;;  %v1341_v43 = vsel %vm1340_vm5, %v1339_v0, %v912_v50 }
 0x29f   :  { %v954_v60 = vadd.f32 %v953_v28, %v952_v29  ;;  %v994_v46 = vadd.f32 %v993_v34, %v992_v5  ;;  %v2472_v12 = vadd.f32 %v1098_v33, %v1096_v8  ;;  %v476_v17 = vpop.permute.xlu0 %475  ;;  %v480_v26 = vpop.permute.xlu1 %479 }
 0x2a0   :  { %v1593_v2 = vpack.c.bf16 %v2468_v36, %v2468_v36  ;;  %v1137_v16 = vmul.f32 %v2394_v7, %v476_v17  ;;  %v1139_v35 = vmul.f32 %v1736_v63, %v2468_v36  ;;  %v1138_v10 = vmul.f32 %v2394_v7, %v480_v26 }
 0x2a1   :  { %v995_v39 = vrot.slane %v994_v46, 1  ;;  %v1594_v6 = vpack.c.bf16 %v2472_v12, %v2472_v12  ;;  %v1140_v48 = vmul.f32 %v1738_v38, %v2472_v12  ;;  %v1342_v3 = vsel %vm210_vm8, %v1341_v43, %v954_v60 }
 0x2a2   :  { %1543 = vst.msk [vmem:[%s2653_s10 + $0x50] sm:$0xf] %vm689_vm15, %v1593_v2  ;;  %v2488_v32 = vadd.f32 %v1139_v35, %v1137_v16  ;;  %1749 = vpow2.f32 %v1257_v56  ;;  %v1299_v63 = vmul.f32 1.442695, %v2121_v42 }
 0x2a3   :  { %1544 = vst.msk [vmem:[%s2653_s10 + $0x54] sm:$0xf] %vm689_vm15, %v1594_v6  ;;  %v2495_v7 = vadd.f32 %v1140_v48, %v1138_v10  ;;  %v488_v45 = vpop.permute.xlu0 %487  ;;  %v492_v57 = vpop.permute.xlu1 %491  ;;  %v996_v51 = vadd.f32 %v995_v39, %v994_v46  ;;  %1751 = vpow2.f32 %v1297_v62 }
 0x2a4   :  { %v1595_v4 = vpack.c.bf16 %v2488_v32, %v2488_v32  ;;  %v1179_v18 = vmul.f32 %v2075_v21, %v488_v45  ;;  %v1181_v9 = vmul.f32 %v1740_v11, %v2488_v32  ;;  %v1180_v42 = vmul.f32 %v2075_v21, %v492_v57 }
 0x2a5   :  { %v1596_v25 = vpack.c.bf16 %v2495_v7, %v2495_v7  ;;  %v1182_v38 = vmul.f32 %v1742_v61, %v2495_v7  ;;  %v2506_v22 = vsel %vm186_vm7, %v1342_v3, %v996_v51  ;;  %1753 = vpow2.f32 %v1299_v63 }
 0x2a6   :  { %1547 = vst.msk [vmem:[%s2653_s10 + $0x58] sm:$0xf] %vm689_vm15, %v1595_v4  ;;  %v2512_v53 = vadd.f32 %v1181_v9, %v1179_v18 }
 0x2a7   :  { %1548 = vst.msk [vmem:[%s2653_s10 + $0x5c] sm:$0xf] %vm689_vm15, %v1596_v25  ;;  %v2518_v21 = vadd.f32 %v1182_v38, %v1180_v42  ;;  %v500_v47 = vpop.permute.xlu0 %499  ;;  %v504_v19 = vpop.permute.xlu1 %503 }
 0x2a8   :  { %v1748_v11 = vpop.eup %1747  ;;  %v1597_v54 = vpack.c.bf16 %v2512_v53, %v2512_v53  ;;  %v1221_v1 = vmul.f32 %v2081_v23, %v500_v47  ;;  %v1223_v52 = vmul.f32 %v2450_v41, %v2512_v53  ;;  %v1222_v0 = vmul.f32 %v2081_v23, %v504_v19 }
 0x2a9   :  { %v1598_v61 = vpack.c.bf16 %v2518_v21, %v2518_v21  ;;  %v1224_v20 = vmul.f32 %v1746_v44, %v2518_v21 }
 0x2aa   :  { %1551 = vst.msk [vmem:[%s2653_s10 + $0x60] sm:$0xf] %vm689_vm15, %v1597_v54  ;;  %v2533_v50 = vadd.f32 %v1223_v52, %v1221_v1 }
 0x2ab   :  { %1552 = vst.msk [vmem:[%s2653_s10 + $0x64] sm:$0xf] %vm689_vm15, %v1598_v61  ;;  %v2539_v41 = vadd.f32 %v1224_v20, %v1222_v0  ;;  %v512_v23 = vpop.permute.xlu0 %511  ;;  %v516_v29 = vpop.permute.xlu1 %515 }
 0x2ac   :  { %v1750_v5 = vpop.eup %1749  ;;  %v1599_v14 = vpack.c.bf16 %v2533_v50, %v2533_v50  ;;  %v1263_v55 = vmul.f32 %v2100_v31, %v512_v23  ;;  %v1265_v59 = vmul.f32 %v1748_v11, %v2533_v50  ;;  %v1264_v30 = vmul.f32 %v2100_v31, %v516_v29 }
 0x2ad   :  { %v1600_v15 = vpack.c.bf16 %v2539_v41, %v2539_v41  ;;  %v1266_v24 = vmul.f32 %v1750_v5, %v2539_v41  ;;  %v1752_v34 = vpop.eup %1751 }
 0x2ae   :  { %1555 = vst.msk [vmem:[%s2653_s10 + $0x68] sm:$0xf] %vm689_vm15, %v1599_v14  ;;  %v2553_v28 = vadd.f32 %v1265_v59, %v1263_v55 }
 0x2af   :  { %1556 = vst.msk [vmem:[%s2653_s10 + $0x6c] sm:$0xf] %vm689_vm15, %v1600_v15  ;;  %v2559_v8 = vadd.f32 %v1266_v24, %v1264_v30  ;;  %v596_v31 = vpop.permute.xlu0 %595  ;;  %v600_v33 = vpop.permute.xlu1 %599 }
 0x2b0   :  { %v1754_v56 = vpop.eup %1753  ;;  %v1601_v43 = vpack.c.bf16 %v2553_v28, %v2553_v28  ;;  %v1028_v60 = vmul.f32 %v2418_v37, %v596_v31  ;;  %v1029_v46 = vmul.f32 %v2432_v49, %v600_v33  ;;  %v1307_v17 = vmul.f32 %v1752_v34, %v2553_v28 }
 0x2b1   :  { %v1602_v26 = vpack.c.bf16 %v2559_v8, %v2559_v8  ;;  %v1308_v62 = vmul.f32 %v1754_v56, %v2559_v8 }
 0x2b2   :  { %1559 = vst.msk [vmem:[%s2653_s10 + $0x70] sm:$0xf] %vm689_vm15, %v1601_v43  ;;  %v1030_v2 = vsel %vm269_vm12, %v1028_v60, 0.0  ;;  %v1031_v16 = vsel %vm269_vm12, %v1029_v46, 0.0 }
 0x2b3   :  { %1560 = vst.msk [vmem:[%s2653_s10 + $0x74] sm:$0xf] %vm689_vm15, %v1602_v26  ;;  %v1032_v37 = vadd.f32 %v1031_v16, %v1030_v2  ;;  %v604_v49 = vpop.permute.xlu0 %603  ;;  %v608_v35 = vpop.permute.xlu1 %607 }
 0x2b4   :  { %v1070_v10 = vmul.f32 %v2444_v58, %v604_v49  ;;  %v1071_v39 = vmul.f32 %v2446_v27, %v608_v35 }
 0x2b5   :  { %v1033_v6 = vrot.slane %v1032_v37, 4 }
 0x2b6   :  { %v1072_v48 = vsel %vm269_vm12, %v1070_v10, 0.0  ;;  %v1073_v3 = vsel %vm269_vm12, %v1071_v39, 0.0 }
 0x2b7   :  { %v1034_v63 = vadd.f32 %v1033_v6, %v1032_v37  ;;  %v1074_v45 = vadd.f32 %v1073_v3, %v1072_v48  ;;  %v612_v57 = vpop.permute.xlu0 %611  ;;  %v616_v51 = vpop.permute.xlu1 %615 }
 0x2b8   :  { %v1112_v44 = vmul.f32 %v2468_v36, %v612_v57  ;;  %v1113_v4 = vmul.f32 %v2472_v12, %v616_v51 }
 0x2b9   :  { %v1035_v18 = vrot.slane %v1034_v63, 2  ;;  %v1075_v9 = vrot.slane %v1074_v45, 4 }
 0x2ba   :  { %v1114_v42 = vsel %vm269_vm12, %v1112_v44, 0.0  ;;  %v1115_v58 = vsel %vm269_vm12, %v1113_v4, 0.0 }
 0x2bb   :  { %v1036_v27 = vadd.f32 %v1035_v18, %v1034_v63  ;;  %v1076_v25 = vadd.f32 %v1075_v9, %v1074_v45  ;;  %v1116_v38 = vadd.f32 %v1115_v58, %v1114_v42  ;;  %v524_v47 = vpop.permute.xlu0 %523  ;;  %v528_v19 = vpop.permute.xlu1 %527 }
 0x2bc   :  { %v1305_v11 = vmul.f32 %v2112_v40, %v524_v47  ;;  %v1306_v54 = vmul.f32 %v2112_v40, %v528_v19 }
 0x2bd   :  { %v1077_v1 = vrot.slane %v1076_v25, 2  ;;  %v1117_v52 = vrot.slane %v1116_v38, 4  ;;  %v1037_v12 = vrot.slane %v1036_v27, 1 }
 0x2be   :  { %v1309_v36 = vadd.f32 %v1307_v17, %v1305_v11  ;;  %v1310_v0 = vadd.f32 %v1308_v62, %v1306_v54 }
 0x2bf   :  { %v1078_v61 = vadd.f32 %v1077_v1, %v1076_v25  ;;  %v1118_v20 = vadd.f32 %v1117_v52, %v1116_v38  ;;  %v620_v23 = vpop.permute.xlu0 %619  ;;  %v624_v29 = vpop.permute.xlu1 %623 }
 0x2c0   :  { %v1154_v5 = vmul.f32 %v2488_v32, %v620_v23  ;;  %v1155_v14 = vmul.f32 %v2495_v7, %v624_v29  ;;  %v1603_v55 = vpack.c.bf16 %v1309_v36, %v1309_v36  ;;  %v1604_v59 = vpack.c.bf16 %v1310_v0, %v1310_v0 }
 0x2c1   :  { %v1079_v30 = vrot.slane %v1078_v61, 1  ;;  %v1119_v15 = vrot.slane %v1118_v20, 2  ;;  %v1038_v32 = vadd.f32 %v1037_v12, %v1036_v27 }
 0x2c2   :  { %v1156_v24 = vsel %vm269_vm12, %v1154_v5, 0.0  ;;  %v1157_v40 = vsel %vm269_vm12, %v1155_v14, 0.0  ;;  %1563 = vst.msk [vmem:[%s2653_s10 + $0x78] sm:$0xf] %vm689_vm15, %v1603_v55  ;;  %1564 = vst.msk [vmem:[%s2653_s10 + $0x7c] sm:$0xf] %vm689_vm15, %v1604_v59 }
 0x2c3   :  { %v1080_v7 = vadd.f32 %v1079_v30, %v1078_v61  ;;  %v1120_v34 = vadd.f32 %v1119_v15, %v1118_v20  ;;  %v1158_v31 = vadd.f32 %v1157_v40, %v1156_v24  ;;  %v628_v33 = vpop.permute.xlu0 %627  ;;  %v632_v56 = vpop.permute.xlu1 %631 }
 0x2c4   :  { %v1196_v43 = vmul.f32 %v2512_v53, %v628_v33  ;;  %v1197_v60 = vmul.f32 %v2518_v21, %v632_v56 }
 0x2c5   :  { %v1344_v46 = vsel %vm1333_vm0, %v1038_v32, %v1080_v7  ;;  %v1121_v17 = vrot.slane %v1120_v34, 1  ;;  %v1159_v26 = vrot.slane %v1158_v31, 4 }
 0x2c6   :  { %v1198_v62 = vsel %vm269_vm12, %v1196_v43, 0.0  ;;  %v1199_v2 = vsel %vm269_vm12, %v1197_v60, 0.0  ;;  %v1565_v43 = vld [vmem:[%s2650_s7] ss:$0 sm:$0xff]  ;;  %s1782_s7 = smov [#allocation2]  }
 0x2c7   :  { %v1122_v16 = vadd.f32 %v1121_v17, %v1120_v34  ;;  %v1160_v37 = vadd.f32 %v1159_v26, %v1158_v31  ;;  %v1200_v49 = vadd.f32 %v1199_v2, %v1198_v62  ;;  %v636_v35 = vpop.permute.xlu0 %635  ;;  %v640_v10 = vpop.permute.xlu1 %639  ;;  %v1358_v17 = vmul.f32 %v1565_v43, %v1929_v13  ;;  %v2660_v26 = vld [vmem:[#allocation5_spill] sm:$0xff]  ;;  %s1470_s13 = sshll.u32 %s1782_s7, 4  ;;  %s1471_s13 = int_to_ptr.vmem [resolvable:$true] %s1470_s13 }
 0x2c8   :  { %v1238_v39 = vmul.f32 %v2533_v50, %v636_v35  ;;  %v1239_v6 = vmul.f32 %v2539_v41, %v640_v10  ;;  %v1359_v62 = vmul.f32 %v1565_v43, %v2660_v26  ;;  %s1755_s14 = scalar_lea.vmem %s1471_s13, 256  ;;  %p1760_p1 = scmp.lt.s32.totalorder %s1471_s13, %s1471_s13 }
 0x2c9   :  { %v1345_v53 = vsel %vm1335_vm2, %v1344_v46, %v1122_v16  ;;  %v1161_v21 = vrot.slane %v1160_v37, 2  ;;  %v1201_v48 = vrot.slane %v1200_v49, 4  ;;  %p1756_p0 = scmp.ne.s32.totalorder %s1471_s13, %s1755_s14  ;;  %p1761_p2 = scmp.lt.s32.totalorder %s1755_s14, %s1755_s14 }
 0x2ca   :  { %v1240_v3 = vsel %vm269_vm12, %v1238_v39, 0.0  ;;  %v1241_v63 = vsel %vm269_vm12, %v1239_v6, 0.0 }
 0x2cb   :  { %v1162_v45 = vadd.f32 %v1161_v21, %v1160_v37  ;;  %v1202_v57 = vadd.f32 %v1201_v48, %v1200_v49  ;;  %v1242_v51 = vadd.f32 %v1241_v63, %v1240_v3  ;;  %v644_v44 = vpop.permute.xlu0 %643  ;;  %v648_v4 = vpop.permute.xlu1 %647  ;;  %v1360_v37 = vadd.f32 %v1358_v17, %v2506_v22  ;;  %p1762_p3 = por %p1761_p2, %p1760_p1 }
 0x2cc   :  { %v1280_v18 = vmul.f32 %v2553_v28, %v644_v44  ;;  %v1281_v9 = vmul.f32 %v2559_v8, %v648_v4 }
 0x2cd   :  { %v1163_v50 = vrot.slane %v1162_v45, 1  ;;  %v1203_v42 = vrot.slane %v1202_v57, 2  ;;  %v1243_v41 = vrot.slane %v1242_v51, 4  ;;  %p1763_p4 = pnand %p1762_p3, %p1756_p0 }
 0x2ce   :  { %v1282_v58 = vsel %vm269_vm12, %v1280_v18, 0.0  ;;  %v1283_v27 = vsel %vm269_vm12, %v1281_v9, 0.0 }
 0x2cf   :  { %v1164_v25 = vadd.f32 %v1163_v50, %v1162_v45  ;;  %v1204_v38 = vadd.f32 %v1203_v42, %v1202_v57  ;;  %v1244_v47 = vadd.f32 %v1243_v41, %v1242_v51  ;;  %v1284_v19 = vadd.f32 %v1283_v27, %v1282_v58  ;;  %v652_v11 = vpop.permute.xlu0 %651  ;;  %v656_v54 = vpop.permute.xlu1 %655 }
 0x2d0   :  { %v1322_v1 = vmul.f32 %v1309_v36, %v652_v11  ;;  %v1323_v52 = vmul.f32 %v1310_v0, %v656_v54 }
 0x2d1   :  { %v1205_v12 = vrot.slane %v1204_v38, 1  ;;  %v1245_v61 = vrot.slane %v1244_v47, 2  ;;  %v1285_v28 = vrot.slane %v1284_v19, 4  ;;  %v1346_v8 = vsel %vm112_vm3, %v1345_v53, %v1164_v25 }
 0x2d2   :  { %v1324_v20 = vsel %vm269_vm12, %v1322_v1, 0.0  ;;  %v1325_v23 = vsel %vm269_vm12, %v1323_v52, 0.0 }
 0x2d3   :  { %v1206_v29 = vadd.f32 %v1205_v12, %v1204_v38  ;;  %v1246_v5 = vadd.f32 %v1245_v61, %v1244_v47  ;;  %v1286_v14 = vadd.f32 %v1285_v28, %v1284_v19  ;;  %v1326_v55 = vadd.f32 %v1325_v23, %v1324_v20  ;;  %v1379_v2 = vpop.permute.xlu0 %1378  ;;  %v1381_v35 = vpop.permute.xlu1 %1380 }
 0x2d4   :  { %v1384_v10 = vmul.f32 %v1379_v2, %v1360_v37 }
 0x2d5   :  { %v1247_v59 = vrot.slane %v1246_v5, 1  ;;  %v1287_v30 = vrot.slane %v1286_v14, 2  ;;  %v1327_v15 = vrot.slane %v1326_v55, 4  ;;  %v1347_v24 = vsel %vm1338_vm4, %v1346_v8, %v1206_v29 }
 0x2d7   :  { %v1248_v36 = vadd.f32 %v1247_v59, %v1246_v5  ;;  %v1288_v0 = vadd.f32 %v1287_v30, %v1286_v14  ;;  %v1328_v40 = vadd.f32 %v1327_v15, %v1326_v55 }
 0x2d9   :  { %v1289_v32 = vrot.slane %v1288_v0, 1  ;;  %v1329_v7 = vrot.slane %v1328_v40, 2  ;;  %v1348_v34 = vsel %vm1340_vm5, %v1347_v24, %v1248_v36 }
 0x2db   :  { %v1290_v31 = vadd.f32 %v1289_v32, %v1288_v0  ;;  %v1330_v33 = vadd.f32 %v1329_v7, %v1328_v40 }
 0x2dd   :  { %v1331_v56 = vrot.slane %v1330_v33, 1  ;;  %v1349_v60 = vsel %vm210_vm8, %v1348_v34, %v1290_v31 }
 0x2df   :  { %v1332_v46 = vadd.f32 %v1331_v56, %v1330_v33 }
 0x2e1   :  { %v1350_v16 = vsel %vm186_vm7, %v1349_v60, %v1332_v46 }
 0x2e2   :  { %v1361_v49 = vadd.f32 %v1359_v62, %v1350_v16 }
 0x2e4   :  { %v1385_v39 = vmul.f32 %v1381_v35, %v1361_v49 }
 0x2e6   :  { %v1386_v6 = vpack.c.bf16 %v1385_v39, %v1384_v10 }
 0x2e8   :  { %1647 = vmatmul.mubr.msk.bf16.vlgmr.msra.gmra.mrb[4].mxu0 %vm269_vm12, %v1386_v6 }
 0x3bb   :  { %v1456_v53 = vpop.f32.mrb[4].mxu0 }
 0x3bc   :  { %1463 = vst.msk [vmem:[#allocation2] sm:$0xff] %vm60_vm1, %v1456_v53  ;;  %v1648_v13 = vpop.f32.mrb[5].mxu0 }
 0x3bd   :  { %v1459_v21 = vpop.f32.mrb[6].mxu0 }
 0x3be   :  { %1464 = vst.msk [vmem:[#allocation2 + $0x8] sm:$0xff] %vm60_vm1, %v1459_v21  ;;  %v1649_v48 = vpop.f32.mrb[7].mxu0 }
 0x3bf   :  { %1766 = shalt.err (!%p1763_p4)
}
 0x3c0   :  { %s1767_s11 = scalar_lea.hbm %s2652_s9, 256 }
 0x3c1   :  { %p1768_p5 = scmp.ne.s32.totalorder %s2652_s9, %s1767_s11  ;;  %p1771_p6 = scmp.lt.u32.totalorder %s1767_s11, %s2652_s9 }
 0x3c3   :  { %p1773_p7 = pnand %p1771_p6, %p1768_p5 }
 0x3c5   :  { %1776 = shalt.err (!%p1773_p7)
}
 0x3c6   :  { %s1783_s6 = smov 128   ;;  %s1784_s19 = smov 8  }
 0x3c7   :  { %1476 = dma.vmem_to_hbm [thread:$0]  %s1471_s13, 256, %s2652_s9, [#allocation3], %s1783_s6, %s1783_s6, %s1784_s19  }
 0x3c8   :  { %1777 = dma.done.wait [#allocation3], 256  }
 0x3c9   :  { %1778 = vsyncadd [#allocation3], 4294967040 }
 0x3ca   :  { %1488 = vsyncpa [#allocation3], 1 }

</bundles_post_ra>
